<compile_context>
chip_gen: v7x
topology: tpu7x:2x2x1
jax: 0.10.0
libtpu: 0.0.40
codegen_flags: <defaults>
</compile_context>

<pallas_src>
import functools

import jax
import jax.numpy as jnp
from jax import lax
from jax.experimental import pallas as pl
from jax.experimental.pallas import tpu as pltpu


def _round_up(x, m):
    return ((x + m - 1) // m) * m


def _decoder_kernel(emb_ref, enc_ref, h0_ref, c0_ref,
                    w_ih_t_ref, w_hh_t_ref, b_gates_ref,
                    w_cls_t_ref, b_cls_ref,
                    logits_ref, attn_ref, h_out_ref, c_out_ref,
                    h_st, c_st, xp_ref, hall_ref,
                    *, T, T_BLK, S, H, needs_tail_mask, unroll):
    tb = pl.program_id(1)
    n_tb = pl.num_programs(1)
    B_BLK = h_st.shape[0]
    E = emb_ref.shape[-1]

    @pl.when(tb == 0)
    def _():
        h_st[...] = h0_ref[...]
        c_st[...] = c0_ref[...]

    # ---- (1) batched input projection: one [T_BLK*B, E] @ [E, 4H] matmul ----
    # B_BLK is a multiple of 8, so the leading-dim merge is sublane-aligned.
    x_all = emb_ref[...].reshape(T_BLK * B_BLK, E)
    xp = jnp.dot(x_all, w_ih_t_ref[...], preferred_element_type=jnp.float32)
    xp_ref[...] = (xp + b_gates_ref[...]).reshape(T_BLK, B_BLK, 4 * H)

    # ---- (2) serial LSTM recurrence: only h @ W_hh^T is on the critical path
    w_hh_t = w_hh_t_ref[...]
    mm_dtype = w_hh_t.dtype
    base = tb * T_BLK

    def run_steps(masked):
        def step(i, carry):
            h, c = carry
            # PyTorch nn.LSTMCell gate order (i, f, g, o)
            gates = xp_ref[i] + jnp.dot(h.astype(mm_dtype), w_hh_t,
                                        preferred_element_type=jnp.float32)
            i_g = jax.nn.sigmoid(gates[:, 0:H])
            f_g = jax.nn.sigmoid(gates[:, H:2 * H])
            g_g = jnp.tanh(gates[:, 2 * H:3 * H])
            o_g = jax.nn.sigmoid(gates[:, 3 * H:4 * H])
            c_new = f_g * c + i_g * g_g
            h_new = o_g * jnp.tanh(c_new)
            if masked:                       # only traced for the last block
                valid = (base + i) < T
                h_new = jnp.where(valid, h_new, h)
                c_new = jnp.where(valid, c_new, c)
            # Write directly in [B, T_BLK, H] layout (no transpose later).
            hall_ref[:, pl.ds(i, 1), :] = h_new[:, None, :].astype(hall_ref.dtype)
            return h_new, c_new

        h, c = lax.fori_loop(0, T_BLK, step, (h_st[...], c_st[...]),
                             unroll=unroll)
        h_st[...] = h
        c_st[...] = c

    if needs_tail_mask:
        @pl.when(tb < n_tb - 1)
        def _():
            run_steps(False)

        @pl.when(tb == n_tb - 1)
        def _():
            run_steps(True)
    else:
        run_steps(False)

    # ---- (3) batched classifier: one [B*T_BLK, H] @ [H, V_pad] matmul -------
    h_bth = hall_ref[...]                               # [B_BLK, T_BLK, H]
    V_pad = w_cls_t_ref.shape[-1]
    logits = (jnp.dot(h_bth.reshape(B_BLK * T_BLK, H), w_cls_t_ref[...],
                      preferred_element_type=jnp.float32)
              + b_cls_ref[...])                         # [B*T_BLK, V_pad]
    logits_ref[...] = logits.reshape(B_BLK, T_BLK, V_pad)   # stored [B,T,V]

    # ---- (4) batched dot-score attention + softmax over encoder positions ---
    scores = jnp.einsum('bth,bsh->bts', h_bth, enc_ref[...],
                        preferred_element_type=jnp.float32)  # [B, T_BLK, S_pad]
    S_pad = scores.shape[-1]
    if S_pad > S:
        col = lax.broadcasted_iota(jnp.int32, scores.shape, 2)
        scores = jnp.where(col < S, scores, -1e30)
    m = jnp.max(scores, axis=-1, keepdims=True)
    e = jnp.exp(scores - m)
    attn_ref[...] = e * pl.reciprocal(jnp.sum(e, axis=-1, keepdims=True),
                                      approx=False)
    # TODO(synk): Attention's `combine` Linear(2H->H) of [context_vector, h] is
    # discarded by Recurrent, so it is intentionally not computed here.

    @pl.when(tb == n_tb - 1)
    def _():
        h_out_ref[...] = h_st[...]
        c_out_ref[...] = c_st[...]


def attention_decoder_forward(dec_input, hidden, encoder_outputs, params,
                              *, param_dtype=jnp.bfloat16, t_blk=None, b_blk=8):
    """Equivalent of AttentionDecoder.forward(..., get_attention=True), n_layers=1."""
    emb_table = params["embedding"]                      # [V, E]  (pad row zeroed)
    w_ih, w_hh = params["w_ih"], params["w_hh"]          # [4H, E], [4H, H]
    b_ih, b_hh = params["b_ih"], params["b_hh"]          # [4H], [4H]
    w_cls, b_cls = params["w_cls"], params["b_cls"]      # [V, H], [V]

    h0, c0 = hidden                                      # each [1, B, H]
    B, T = dec_input.shape
    S, H = encoder_outputs.shape[1], h0.shape[-1]
    E = emb_table.shape[1]
    V = w_cls.shape[0]

    # lane-dense padding for the two stored last-dims
    V_pad = _round_up(V, 128)
    S_pad = _round_up(S, 128)

    # sublane-dense batch blocking (8 rows minimum); batch axis is parallel.
    B_BLK = _round_up(max(int(b_blk), 1), 8)
    B_pad = _round_up(B, B_BLK)
    num_b = B_pad // B_BLK

    # time blocking: single block for short sequences, 64-step blocks otherwise
    if t_blk is None:
        t_blk = 64
    T_BLK = T if T <= t_blk else _round_up(t_blk, 8)
    num_t = -(-T // T_BLK)
    T_pad = num_t * T_BLK
    needs_tail_mask = T_pad != T
    unroll = max(1, min(8, T_BLK))

    # glue: embedding lookup + time-major reshape stay in plain JAX
    # TODO(synk): the embedding gather itself stays in XLA (no Pallas gather here).
    embedded = emb_table[dec_input]                                    # [B, T, E]
    emb_tbe = jnp.transpose(embedded, (1, 0, 2)).astype(param_dtype)   # [T, B, E]
    emb_tbe = jnp.pad(emb_tbe, ((0, T_pad - T), (0, B_pad - B), (0, 0)))

    enc = encoder_outputs.astype(param_dtype)
    enc = jnp.pad(enc, ((0, B_pad - B), (0, S_pad - S), (0, 0)))

    h0_p = jnp.pad(h0[0].astype(jnp.float32), ((0, B_pad - B), (0, 0)))
    c0_p = jnp.pad(c0[0].astype(jnp.float32), ((0, B_pad - B), (0, 0)))

    w_ih_t = jnp.transpose(w_ih).astype(param_dtype)                   # [E, 4H]
    w_hh_t = jnp.transpose(w_hh).astype(param_dtype)                   # [H, 4H]
    b_gates = (b_ih + b_hh).reshape(1, -1).astype(jnp.float32)         # [1, 4H]
    w_cls_t = jnp.pad(jnp.transpose(w_cls).astype(param_dtype),
                      ((0, 0), (0, V_pad - V)))                        # [H, V_pad]
    b_cls_p = jnp.pad(b_cls.reshape(1, -1).astype(jnp.float32),
                      ((0, 0), (0, V_pad - V)))                        # [1, V_pad]

    out_shapes = (
        jax.ShapeDtypeStruct((B_pad, T_pad, V_pad), jnp.float32),   # logits [B,T,V]
        jax.ShapeDtypeStruct((B_pad, T_pad, S_pad), jnp.float32),   # attention [B,T,S]
        jax.ShapeDtypeStruct((B_pad, H), jnp.float32),              # final h
        jax.ShapeDtypeStruct((B_pad, H), jnp.float32),              # final c
    )

    kernel = functools.partial(_decoder_kernel, T=T, T_BLK=T_BLK, S=S, H=H,
                               needs_tail_mask=needs_tail_mask, unroll=unroll)

    # cost estimate + explicit VMEM budget
    p_bytes = jnp.dtype(param_dtype).itemsize
    flops = 2 * B_pad * T_pad * (E * 4 * H + H * 4 * H + H * V_pad + H * S_pad)
    transcendentals = B_pad * T_pad * (5 * H + S_pad)
    bytes_accessed = (emb_tbe.size * p_bytes + enc.size * p_bytes
                      + (w_ih_t.size + w_hh_t.size + w_cls_t.size) * p_bytes
                      + (b_gates.size + b_cls_p.size + h0_p.size + c0_p.size) * 4
                      + (B_pad * T_pad * (V_pad + S_pad) + 2 * B_pad * H) * 4)
    cost = pl.CostEstimate(flops=int(flops),
                           transcendentals=int(transcendentals),
                           bytes_accessed=int(bytes_accessed))

    est_vmem = (2 * T_BLK * B_BLK * E * p_bytes                # emb block (x2 bufs)
                + B_BLK * S_pad * H * p_bytes                  # enc (single-buffered)
                + 2 * B_BLK * H * 4                            # h0 + c0
                + (w_ih_t.size + w_hh_t.size + w_cls_t.size) * p_bytes
                + (b_gates.size + b_cls_p.size) * 4
                + 2 * B_BLK * T_BLK * (V_pad + S_pad) * 4      # logits/attn out (x2)
                + 4 * B_BLK * H * 4                            # h_out/c_out (x2)
                + (2 * B_BLK * H + T_BLK * B_BLK * 4 * H) * 4  # f32 scratch
                + B_BLK * T_BLK * H * p_bytes)                 # hall scratch
    vmem_limit = int(min(128 * 1024 * 1024, max(32 * 1024 * 1024, 2 * est_vmem)))

    inv = dict(pipeline_mode=pl.Buffered(1))   # single-buffer grid-invariant blocks

    grid_spec = pltpu.PrefetchScalarGridSpec(
        num_scalar_prefetch=0,
        grid=(num_b, num_t),
        in_specs=[
            pl.BlockSpec((T_BLK, B_BLK, E), lambda bb, tb: (tb, bb, 0)),       # embedded
            pl.BlockSpec((B_BLK, S_pad, H), lambda bb, tb: (bb, 0, 0), **inv), # encoder
            pl.BlockSpec((B_BLK, H), lambda bb, tb: (bb, 0), **inv),           # h0
            pl.BlockSpec((B_BLK, H), lambda bb, tb: (bb, 0), **inv),           # c0
            pl.BlockSpec((E, 4 * H), lambda bb, tb: (0, 0), **inv),            # W_ih^T
            pl.BlockSpec((H, 4 * H), lambda bb, tb: (0, 0), **inv),            # W_hh^T
            pl.BlockSpec((1, 4 * H), lambda bb, tb: (0, 0), **inv),            # b_ih+b_hh
            pl.BlockSpec((H, V_pad), lambda bb, tb: (0, 0), **inv),            # W_cls^T
            pl.BlockSpec((1, V_pad), lambda bb, tb: (0, 0), **inv),            # b_cls
        ],
        out_specs=(
            pl.BlockSpec((B_BLK, T_BLK, V_pad), lambda bb, tb: (bb, tb, 0)),
            pl.BlockSpec((B_BLK, T_BLK, S_pad), lambda bb, tb: (bb, tb, 0)),
            pl.BlockSpec((B_BLK, H), lambda bb, tb: (bb, 0)),
            pl.BlockSpec((B_BLK, H), lambda bb, tb: (bb, 0)),
        ),
        scratch_shapes=[
            pltpu.VMEM((B_BLK, H), jnp.float32),             # running h state
            pltpu.VMEM((B_BLK, H), jnp.float32),             # running c state
            pltpu.VMEM((T_BLK, B_BLK, 4 * H), jnp.float32),  # precomputed x-projection
            pltpu.VMEM((B_BLK, T_BLK, H), param_dtype),      # h_t for the whole block
        ],
    )

    logits_p, attn_p, h_fin, c_fin = pl.pallas_call(
        kernel,
        out_shape=out_shapes,
        grid_spec=grid_spec,
        cost_estimate=cost,
        compiler_params=pltpu.CompilerParams(
            dimension_semantics=("parallel", "arbitrary"),
            vmem_limit_bytes=vmem_limit),
    )(
        emb_tbe, enc, h0_p, c0_p,
        w_ih_t, w_hh_t, b_gates, w_cls_t, b_cls_p,
    )

    logits = logits_p[:B, :T, :V]                                      # [B, T, V]
    attention_score = jnp.transpose(attn_p[:B, :T, :S], (0, 2, 1))     # [B, S, T]
    new_hidden = (h_fin[:B][None], c_fin[:B][None])                    # each [1, B, H]
    return logits, new_hidden, attention_score


def _ref_forward(dec_input, hidden, encoder_outputs, params):
    """Pure-JAX reference mirroring the PyTorch forward (n_layers=1, dot attention)."""
    emb = params["embedding"][dec_input]                 # [B, T, E]
    h, c = hidden[0][0], hidden[1][0]
    logits_list, attn_list = [], []
    H = h.shape[-1]
    T = dec_input.shape[1]
    for t in range(T):
        x = emb[:, t, :]
        gates = (x @ params["w_ih"].T + params["b_ih"]
                 + h @ params["w_hh"].T + params["b_hh"])
        i_g = jax.nn.sigmoid(gates[:, 0:H])
        f_g = jax.nn.sigmoid(gates[:, H:2 * H])
        g_g = jnp.tanh(gates[:, 2 * H:3 * H])
        o_g = jax.nn.sigmoid(gates[:, 3 * H:4 * H])
        c = f_g * c + i_g * g_g
        h = o_g * jnp.tanh(c)
        scores = jnp.einsum('bsh,bh->bs', encoder_outputs, h)
        attn_list.append(jax.nn.softmax(scores, axis=-1))
        logits_list.append(h @ params["w_cls"].T + params["b_cls"])
    logits = jnp.stack(logits_list, axis=1)              # [B, T, V]
    attention = jnp.stack(attn_list, axis=2)             # [B, S, T]
    return logits, (h[None], c[None]), attention


if __name__ == "__main__":
    # config (matches AttentionDecoder(embedding_size=V, embedding_dim=E, rnn_dim=H,
    #                                  rnn_bias=True, pad_id=0, n_layers=1, 'dot'))
    B, T, S = 2, 4, 8
    V, E, H = 16, 8, 32
    PAD = 0

    key = jax.random.PRNGKey(0)
    ks = jax.random.split(key, 10)

    emb_table = 0.1 * jax.random.normal(ks[0], (V, E), jnp.float32)
    emb_table = emb_table.at[PAD].set(0.0)               # padding_idx row is zero
    params = {
        "embedding": emb_table,
        "w_ih": 0.1 * jax.random.normal(ks[1], (4 * H, E), jnp.float32),
        "w_hh": 0.1 * jax.random.normal(ks[2], (4 * H, H), jnp.float32),
        "b_ih": 0.1 * jax.random.normal(ks[3], (4 * H,), jnp.float32),
        "b_hh": 0.1 * jax.random.normal(ks[4], (4 * H,), jnp.float32),
        "w_cls": 0.1 * jax.random.normal(ks[5], (V, H), jnp.float32),
        "b_cls": 0.1 * jax.random.normal(ks[6], (V,), jnp.float32),
    }

    dec_input = jax.random.randint(ks[7], (B, T), 0, V, jnp.int32)
    encoder_outputs = 0.1 * jax.random.normal(ks[8], (B, S, H), jnp.float32)
    h0 = 0.1 * jax.random.normal(ks[9], (1, B, H), jnp.float32)
    c0 = jnp.zeros((1, B, H), jnp.float32)
    hidden = (h0, c0)

    r_logits, r_hidden, r_attn = _ref_forward(dec_input, hidden, encoder_outputs, params)

    # --- run 1: f32 storage (tight correctness check of the kernel structure) ---
    logits32, hid32, attn32 = attention_decoder_forward(
        dec_input, hidden, encoder_outputs, params, param_dtype=jnp.float32)
    jax.block_until_ready((logits32, hid32, attn32))
    assert jnp.allclose(logits32, r_logits, atol=1e-4, rtol=1e-4)
    assert jnp.allclose(attn32, r_attn, atol=1e-4, rtol=1e-4)
    assert jnp.allclose(hid32[0], r_hidden[0], atol=1e-4, rtol=1e-4)
    assert jnp.allclose(hid32[1], r_hidden[1], atol=1e-4, rtol=1e-4)

    # --- run 2: default bf16 storage for big operands (perf path) ---
    logits, new_hidden, attn = attention_decoder_forward(
        dec_input, hidden, encoder_outputs, params)
    jax.block_until_ready((logits, new_hidden, attn))
    assert jnp.allclose(logits, r_logits, atol=2e-2, rtol=2e-2)
    assert jnp.allclose(attn, r_attn, atol=1e-2, rtol=1e-2)
    assert jnp.allclose(new_hidden[0], r_hidden[0], atol=1e-2, rtol=1e-2)
    assert jnp.allclose(new_hidden[1], r_hidden[1], atol=1e-2, rtol=1e-2)

    print("KERNEL_OK")
</pallas_src>

<mosaic_0001>
module attributes {stable_mosaic.version = 11 : i64} {
  func.func @_decoder_kernel(%arg0: i32, %arg1: i32, %arg2: memref<4x8x8xf32, #tpu.memory_space<vmem>>, %arg3: memref<8x128x32xf32, #tpu.memory_space<vmem>>, %arg4: memref<8x32xf32, #tpu.memory_space<vmem>>, %arg5: memref<8x32xf32, #tpu.memory_space<vmem>>, %arg6: memref<8x128xf32, #tpu.memory_space<vmem>>, %arg7: memref<32x128xf32, #tpu.memory_space<vmem>>, %arg8: memref<1x128xf32, #tpu.memory_space<vmem>>, %arg9: memref<32x128xf32, #tpu.memory_space<vmem>>, %arg10: memref<1x128xf32, #tpu.memory_space<vmem>>, %arg11: memref<8x4x128xf32, #tpu.memory_space<vmem>>, %arg12: memref<8x4x128xf32, #tpu.memory_space<vmem>>, %arg13: memref<8x32xf32, #tpu.memory_space<vmem>>, %arg14: memref<8x32xf32, #tpu.memory_space<vmem>>, %arg15: memref<8x32xf32, #tpu.memory_space<vmem>>, %arg16: memref<8x32xf32, #tpu.memory_space<vmem>>, %arg17: memref<4x8x128xf32, #tpu.memory_space<vmem>>, %arg18: memref<8x4x32xf32, #tpu.memory_space<vmem>>) attributes {dimension_semantics = [#tpu.dimension_semantics<parallel>, #tpu.dimension_semantics<arbitrary>], iteration_bounds = array<i64: 1, 1>, scalar_prefetch = 0 : i64, scratch_operands = 4 : i64, tpu.core_type = #tpu.core_type<tc>, window_params = [{transform_indices = @transform_0, window_bounds = array<i64: 4, 8, 8>}, {pipeline_mode = #tpu.pipeline_mode<synchronous>, transform_indices = @transform_1, window_bounds = array<i64: 8, 128, 32>}, {pipeline_mode = #tpu.pipeline_mode<synchronous>, transform_indices = @transform_2, window_bounds = array<i64: 8, 32>}, {pipeline_mode = #tpu.pipeline_mode<synchronous>, transform_indices = @transform_3, window_bounds = array<i64: 8, 32>}, {pipeline_mode = #tpu.pipeline_mode<synchronous>, transform_indices = @transform_4, window_bounds = array<i64: 8, 128>}, {pipeline_mode = #tpu.pipeline_mode<synchronous>, transform_indices = @transform_5, window_bounds = array<i64: 32, 128>}, {pipeline_mode = #tpu.pipeline_mode<synchronous>, transform_indices = @transform_6, window_bounds = array<i64: 1, 128>}, {pipeline_mode = #tpu.pipeline_mode<synchronous>, transform_indices = @transform_7, window_bounds = array<i64: 32, 128>}, {pipeline_mode = #tpu.pipeline_mode<synchronous>, transform_indices = @transform_8, window_bounds = array<i64: 1, 128>}, {transform_indices = @transform_9, window_bounds = array<i64: 8, 4, 128>}, {transform_indices = @transform_10, window_bounds = array<i64: 8, 4, 128>}, {transform_indices = @transform_11, window_bounds = array<i64: 8, 32>}, {transform_indices = @transform_12, window_bounds = array<i64: 8, 32>}]} {
    %c0_i32 = arith.constant 0 : i32
    %0 = arith.cmpi eq, %arg1, %c0_i32 : i32
    %1 = arith.extui %0 : i1 to i32
    %c0_i32_0 = arith.constant 0 : i32
    %2 = arith.cmpi ne, %1, %c0_i32_0 : i32
    scf.if %2 {
      %c0_76 = arith.constant 0 : index
      %c0_77 = arith.constant 0 : index
      %179 = vector.load %arg4[%c0_76, %c0_77] : memref<8x32xf32, #tpu.memory_space<vmem>>, vector<8x32xf32>
      %c0_78 = arith.constant 0 : index
      %c0_79 = arith.constant 0 : index
      %180 = vector.load %arg15[%c0_78, %c0_79] : memref<8x32xf32, #tpu.memory_space<vmem>>, vector<8x32xf32>
      tpu.vector_store %arg15[%c0_78, %c0_79], %179 {strides = array<i32>} : memref<8x32xf32, #tpu.memory_space<vmem>>, vector<8x32xf32>,
      %c0_80 = arith.constant 0 : index
      %c0_81 = arith.constant 0 : index
      %181 = vector.load %arg5[%c0_80, %c0_81] : memref<8x32xf32, #tpu.memory_space<vmem>>, vector<8x32xf32>
      %c0_82 = arith.constant 0 : index
      %c0_83 = arith.constant 0 : index
      %182 = vector.load %arg16[%c0_82, %c0_83] : memref<8x32xf32, #tpu.memory_space<vmem>>, vector<8x32xf32>
      tpu.vector_store %arg16[%c0_82, %c0_83], %181 {strides = array<i32>} : memref<8x32xf32, #tpu.memory_space<vmem>>, vector<8x32xf32>,
    } else {
    }
    %c0 = arith.constant 0 : index
    %c0_1 = arith.constant 0 : index
    %c0_2 = arith.constant 0 : index
    %3 = vector.load %arg2[%c0, %c0_1, %c0_2] : memref<4x8x8xf32, #tpu.memory_space<vmem>>, vector<4x8x8xf32>
    %4 = vector.shape_cast %3 : vector<4x8x8xf32> to vector<32x8xf32>
    %c0_3 = arith.constant 0 : index
    %c0_4 = arith.constant 0 : index
    %5 = vector.load %arg6[%c0_3, %c0_4] : memref<8x128xf32, #tpu.memory_space<vmem>>, vector<8x128xf32>
    %cst = arith.constant dense<0.000000e+00> : vector<32x128xf32>
    %6 = tpu.matmul %4, %5, %cst {dimension_numbers = #tpu.dot_dimension_numbers<[1], [0], [0], [1], [0, 0, 1, 1], [], []>} : vector<32x8xf32>, vector<8x128xf32>, vector<32x128xf32> -> vector<32x128xf32>
    %c0_5 = arith.constant 0 : index
    %c0_6 = arith.constant 0 : index
    %7 = vector.load %arg8[%c0_5, %c0_6] : memref<1x128xf32, #tpu.memory_space<vmem>>, vector<1x128xf32>
    %8 = vector.broadcast %7 : vector<1x128xf32> to vector<32x128xf32>
    %9 = arith.addf %6, %8 : vector<32x128xf32>
    %10 = vector.shape_cast %9 : vector<32x128xf32> to vector<4x8x128xf32>
    %c0_7 = arith.constant 0 : index
    %c0_8 = arith.constant 0 : index
    %c0_9 = arith.constant 0 : index
    %11 = vector.load %arg17[%c0_7, %c0_8, %c0_9] : memref<4x8x128xf32, #tpu.memory_space<vmem>>, vector<4x8x128xf32>
    tpu.vector_store %arg17[%c0_7, %c0_8, %c0_9], %10 {strides = array<i32>} : memref<4x8x128xf32, #tpu.memory_space<vmem>>, vector<4x8x128xf32>,
    %c0_10 = arith.constant 0 : index
    %c0_11 = arith.constant 0 : index
    %12 = vector.load %arg7[%c0_10, %c0_11] : memref<32x128xf32, #tpu.memory_space<vmem>>, vector<32x128xf32>
    %c0_12 = arith.constant 0 : index
    %c0_13 = arith.constant 0 : index
    %13 = vector.load %arg15[%c0_12, %c0_13] : memref<8x32xf32, #tpu.memory_space<vmem>>, vector<8x32xf32>
    %c0_14 = arith.constant 0 : index
    %c0_15 = arith.constant 0 : index
    %14 = vector.load %arg16[%c0_14, %c0_15] : memref<8x32xf32, #tpu.memory_space<vmem>>, vector<8x32xf32>
    %c0_i32_16 = arith.constant 0 : i32
    %15 = arith.index_cast %c0_i32_16 : i32 to index
    %c0_17 = arith.constant 0 : index
    %c0_18 = arith.constant 0 : index
    %16 = vector.load %arg17[%15, %c0_17, %c0_18] : memref<4x8x128xf32, #tpu.memory_space<vmem>>, vector<1x8x128xf32>
    %17 = vector.shape_cast %16 : vector<1x8x128xf32> to vector<8x128xf32>
    %cst_19 = arith.constant dense<0.000000e+00> : vector<8x128xf32>
    %18 = tpu.matmul %13, %12, %cst_19 {dimension_numbers = #tpu.dot_dimension_numbers<[1], [0], [0], [1], [0, 0, 1, 1], [], []>} : vector<8x32xf32>, vector<32x128xf32>, vector<8x128xf32> -> vector<8x128xf32>
    %19 = arith.addf %17, %18 : vector<8x128xf32>
    %20 = vector.extract_strided_slice %19 {offsets = [0, 0], sizes = [8, 32], strides = [1, 1]} : vector<8x128xf32> to vector<8x32xf32>
    %21 = arith.negf %20 : vector<8x32xf32>
    %22 = math.exp %21 : vector<8x32xf32>
    %cst_20 = arith.constant 1.000000e+00 : f32
    %23 = vector.broadcast %cst_20 : f32 to vector<8x32xf32>
    %24 = arith.addf %23, %22 : vector<8x32xf32>
    %25 = arith.divf %23, %24 : vector<8x32xf32>
    %26 = vector.extract_strided_slice %19 {offsets = [0, 32], sizes = [8, 32], strides = [1, 1]} : vector<8x128xf32> to vector<8x32xf32>
    %27 = arith.negf %26 : vector<8x32xf32>
    %28 = math.exp %27 : vector<8x32xf32>
    %cst_21 = arith.constant 1.000000e+00 : f32
    %29 = vector.broadcast %cst_21 : f32 to vector<8x32xf32>
    %30 = arith.addf %29, %28 : vector<8x32xf32>
    %31 = arith.divf %29, %30 : vector<8x32xf32>
    %32 = vector.extract_strided_slice %19 {offsets = [0, 64], sizes = [8, 32], strides = [1, 1]} : vector<8x128xf32> to vector<8x32xf32>
    %33 = math.tanh %32 : vector<8x32xf32>
    %34 = vector.extract_strided_slice %19 {offsets = [0, 96], sizes = [8, 32], strides = [1, 1]} : vector<8x128xf32> to vector<8x32xf32>
    %35 = arith.negf %34 : vector<8x32xf32>
    %36 = math.exp %35 : vector<8x32xf32>
    %cst_22 = arith.constant 1.000000e+00 : f32
    %37 = vector.broadcast %cst_22 : f32 to vector<8x32xf32>
    %38 = arith.addf %37, %36 : vector<8x32xf32>
    %39 = arith.divf %37, %38 : vector<8x32xf32>
    %40 = arith.mulf %31, %14 : vector<8x32xf32>
    %41 = arith.mulf %25, %33 : vector<8x32xf32>
    %42 = arith.addf %40, %41 : vector<8x32xf32>
    %43 = math.tanh %42 : vector<8x32xf32>
    %44 = arith.mulf %39, %43 : vector<8x32xf32>
    %45 = vector.shape_cast %44 : vector<8x32xf32> to vector<8x1x32xf32>
    %c0_23 = arith.constant 0 : index
    %46 = arith.index_cast %c0_i32_16 : i32 to index
    %c0_24 = arith.constant 0 : index
    %47 = vector.load %arg18[%c0_23, %46, %c0_24] : memref<8x4x32xf32, #tpu.memory_space<vmem>>, vector<8x1x32xf32>
    tpu.vector_store %arg18[%c0_23, %46, %c0_24], %45 {strides = array<i32>} : memref<8x4x32xf32, #tpu.memory_space<vmem>>, vector<8x1x32xf32>,
    %c1_i32 = arith.constant 1 : i32
    %48 = arith.index_cast %c1_i32 : i32 to index
    %c0_25 = arith.constant 0 : index
    %c0_26 = arith.constant 0 : index
    %49 = vector.load %arg17[%48, %c0_25, %c0_26] : memref<4x8x128xf32, #tpu.memory_space<vmem>>, vector<1x8x128xf32>
    %50 = vector.shape_cast %49 : vector<1x8x128xf32> to vector<8x128xf32>
    %cst_27 = arith.constant dense<0.000000e+00> : vector<8x128xf32>
    %51 = tpu.matmul %44, %12, %cst_27 {dimension_numbers = #tpu.dot_dimension_numbers<[1], [0], [0], [1], [0, 0, 1, 1], [], []>} : vector<8x32xf32>, vector<32x128xf32>, vector<8x128xf32> -> vector<8x128xf32>
    %52 = arith.addf %50, %51 : vector<8x128xf32>
    %53 = vector.extract_strided_slice %52 {offsets = [0, 0], sizes = [8, 32], strides = [1, 1]} : vector<8x128xf32> to vector<8x32xf32>
    %54 = arith.negf %53 : vector<8x32xf32>
    %55 = math.exp %54 : vector<8x32xf32>
    %cst_28 = arith.constant 1.000000e+00 : f32
    %56 = vector.broadcast %cst_28 : f32 to vector<8x32xf32>
    %57 = arith.addf %56, %55 : vector<8x32xf32>
    %58 = arith.divf %56, %57 : vector<8x32xf32>
    %59 = vector.extract_strided_slice %52 {offsets = [0, 32], sizes = [8, 32], strides = [1, 1]} : vector<8x128xf32> to vector<8x32xf32>
    %60 = arith.negf %59 : vector<8x32xf32>
    %61 = math.exp %60 : vector<8x32xf32>
    %cst_29 = arith.constant 1.000000e+00 : f32
    %62 = vector.broadcast %cst_29 : f32 to vector<8x32xf32>
    %63 = arith.addf %62, %61 : vector<8x32xf32>
    %64 = arith.divf %62, %63 : vector<8x32xf32>
    %65 = vector.extract_strided_slice %52 {offsets = [0, 64], sizes = [8, 32], strides = [1, 1]} : vector<8x128xf32> to vector<8x32xf32>
    %66 = math.tanh %65 : vector<8x32xf32>
    %67 = vector.extract_strided_slice %52 {offsets = [0, 96], sizes = [8, 32], strides = [1, 1]} : vector<8x128xf32> to vector<8x32xf32>
    %68 = arith.negf %67 : vector<8x32xf32>
    %69 = math.exp %68 : vector<8x32xf32>
    %cst_30 = arith.constant 1.000000e+00 : f32
    %70 = vector.broadcast %cst_30 : f32 to vector<8x32xf32>
    %71 = arith.addf %70, %69 : vector<8x32xf32>
    %72 = arith.divf %70, %71 : vector<8x32xf32>
    %73 = arith.mulf %64, %42 : vector<8x32xf32>
    %74 = arith.mulf %58, %66 : vector<8x32xf32>
    %75 = arith.addf %73, %74 : vector<8x32xf32>
    %76 = math.tanh %75 : vector<8x32xf32>
    %77 = arith.mulf %72, %76 : vector<8x32xf32>
    %78 = vector.shape_cast %77 : vector<8x32xf32> to vector<8x1x32xf32>
    %c0_31 = arith.constant 0 : index
    %79 = arith.index_cast %c1_i32 : i32 to index
    %c0_32 = arith.constant 0 : index
    %80 = vector.load %arg18[%c0_31, %79, %c0_32] : memref<8x4x32xf32, #tpu.memory_space<vmem>>, vector<8x1x32xf32>
    tpu.vector_store %arg18[%c0_31, %79, %c0_32], %78 {strides = array<i32>} : memref<8x4x32xf32, #tpu.memory_space<vmem>>, vector<8x1x32xf32>,
    %c2_i32 = arith.constant 2 : i32
    %81 = arith.index_cast %c2_i32 : i32 to index
    %c0_33 = arith.constant 0 : index
    %c0_34 = arith.constant 0 : index
    %82 = vector.load %arg17[%81, %c0_33, %c0_34] : memref<4x8x128xf32, #tpu.memory_space<vmem>>, vector<1x8x128xf32>
    %83 = vector.shape_cast %82 : vector<1x8x128xf32> to vector<8x128xf32>
    %cst_35 = arith.constant dense<0.000000e+00> : vector<8x128xf32>
    %84 = tpu.matmul %77, %12, %cst_35 {dimension_numbers = #tpu.dot_dimension_numbers<[1], [0], [0], [1], [0, 0, 1, 1], [], []>} : vector<8x32xf32>, vector<32x128xf32>, vector<8x128xf32> -> vector<8x128xf32>
    %85 = arith.addf %83, %84 : vector<8x128xf32>
    %86 = vector.extract_strided_slice %85 {offsets = [0, 0], sizes = [8, 32], strides = [1, 1]} : vector<8x128xf32> to vector<8x32xf32>
    %87 = arith.negf %86 : vector<8x32xf32>
    %88 = math.exp %87 : vector<8x32xf32>
    %cst_36 = arith.constant 1.000000e+00 : f32
    %89 = vector.broadcast %cst_36 : f32 to vector<8x32xf32>
    %90 = arith.addf %89, %88 : vector<8x32xf32>
    %91 = arith.divf %89, %90 : vector<8x32xf32>
    %92 = vector.extract_strided_slice %85 {offsets = [0, 32], sizes = [8, 32], strides = [1, 1]} : vector<8x128xf32> to vector<8x32xf32>
    %93 = arith.negf %92 : vector<8x32xf32>
    %94 = math.exp %93 : vector<8x32xf32>
    %cst_37 = arith.constant 1.000000e+00 : f32
    %95 = vector.broadcast %cst_37 : f32 to vector<8x32xf32>
    %96 = arith.addf %95, %94 : vector<8x32xf32>
    %97 = arith.divf %95, %96 : vector<8x32xf32>
    %98 = vector.extract_strided_slice %85 {offsets = [0, 64], sizes = [8, 32], strides = [1, 1]} : vector<8x128xf32> to vector<8x32xf32>
    %99 = math.tanh %98 : vector<8x32xf32>
    %100 = vector.extract_strided_slice %85 {offsets = [0, 96], sizes = [8, 32], strides = [1, 1]} : vector<8x128xf32> to vector<8x32xf32>
    %101 = arith.negf %100 : vector<8x32xf32>
    %102 = math.exp %101 : vector<8x32xf32>
    %cst_38 = arith.constant 1.000000e+00 : f32
    %103 = vector.broadcast %cst_38 : f32 to vector<8x32xf32>
    %104 = arith.addf %103, %102 : vector<8x32xf32>
    %105 = arith.divf %103, %104 : vector<8x32xf32>
    %106 = arith.mulf %97, %75 : vector<8x32xf32>
    %107 = arith.mulf %91, %99 : vector<8x32xf32>
    %108 = arith.addf %106, %107 : vector<8x32xf32>
    %109 = math.tanh %108 : vector<8x32xf32>
    %110 = arith.mulf %105, %109 : vector<8x32xf32>
    %111 = vector.shape_cast %110 : vector<8x32xf32> to vector<8x1x32xf32>
    %c0_39 = arith.constant 0 : index
    %112 = arith.index_cast %c2_i32 : i32 to index
    %c0_40 = arith.constant 0 : index
    %113 = vector.load %arg18[%c0_39, %112, %c0_40] : memref<8x4x32xf32, #tpu.memory_space<vmem>>, vector<8x1x32xf32>
    tpu.vector_store %arg18[%c0_39, %112, %c0_40], %111 {strides = array<i32>} : memref<8x4x32xf32, #tpu.memory_space<vmem>>, vector<8x1x32xf32>,
    %c3_i32 = arith.constant 3 : i32
    %114 = arith.index_cast %c3_i32 : i32 to index
    %c0_41 = arith.constant 0 : index
    %c0_42 = arith.constant 0 : index
    %115 = vector.load %arg17[%114, %c0_41, %c0_42] : memref<4x8x128xf32, #tpu.memory_space<vmem>>, vector<1x8x128xf32>
    %116 = vector.shape_cast %115 : vector<1x8x128xf32> to vector<8x128xf32>
    %cst_43 = arith.constant dense<0.000000e+00> : vector<8x128xf32>
    %117 = tpu.matmul %110, %12, %cst_43 {dimension_numbers = #tpu.dot_dimension_numbers<[1], [0], [0], [1], [0, 0, 1, 1], [], []>} : vector<8x32xf32>, vector<32x128xf32>, vector<8x128xf32> -> vector<8x128xf32>
    %118 = arith.addf %116, %117 : vector<8x128xf32>
    %119 = vector.extract_strided_slice %118 {offsets = [0, 0], sizes = [8, 32], strides = [1, 1]} : vector<8x128xf32> to vector<8x32xf32>
    %120 = arith.negf %119 : vector<8x32xf32>
    %121 = math.exp %120 : vector<8x32xf32>
    %cst_44 = arith.constant 1.000000e+00 : f32
    %122 = vector.broadcast %cst_44 : f32 to vector<8x32xf32>
    %123 = arith.addf %122, %121 : vector<8x32xf32>
    %124 = arith.divf %122, %123 : vector<8x32xf32>
    %125 = vector.extract_strided_slice %118 {offsets = [0, 32], sizes = [8, 32], strides = [1, 1]} : vector<8x128xf32> to vector<8x32xf32>
    %126 = arith.negf %125 : vector<8x32xf32>
    %127 = math.exp %126 : vector<8x32xf32>
    %cst_45 = arith.constant 1.000000e+00 : f32
    %128 = vector.broadcast %cst_45 : f32 to vector<8x32xf32>
    %129 = arith.addf %128, %127 : vector<8x32xf32>
    %130 = arith.divf %128, %129 : vector<8x32xf32>
    %131 = vector.extract_strided_slice %118 {offsets = [0, 64], sizes = [8, 32], strides = [1, 1]} : vector<8x128xf32> to vector<8x32xf32>
    %132 = math.tanh %131 : vector<8x32xf32>
    %133 = vector.extract_strided_slice %118 {offsets = [0, 96], sizes = [8, 32], strides = [1, 1]} : vector<8x128xf32> to vector<8x32xf32>
    %134 = arith.negf %133 : vector<8x32xf32>
    %135 = math.exp %134 : vector<8x32xf32>
    %cst_46 = arith.constant 1.000000e+00 : f32
    %136 = vector.broadcast %cst_46 : f32 to vector<8x32xf32>
    %137 = arith.addf %136, %135 : vector<8x32xf32>
    %138 = arith.divf %136, %137 : vector<8x32xf32>
    %139 = arith.mulf %130, %108 : vector<8x32xf32>
    %140 = arith.mulf %124, %132 : vector<8x32xf32>
    %141 = arith.addf %139, %140 : vector<8x32xf32>
    %142 = math.tanh %141 : vector<8x32xf32>
    %143 = arith.mulf %138, %142 : vector<8x32xf32>
    %144 = vector.shape_cast %143 : vector<8x32xf32> to vector<8x1x32xf32>
    %c0_47 = arith.constant 0 : index
    %145 = arith.index_cast %c3_i32 : i32 to index
    %c0_48 = arith.constant 0 : index
    %146 = vector.load %arg18[%c0_47, %145, %c0_48] : memref<8x4x32xf32, #tpu.memory_space<vmem>>, vector<8x1x32xf32>
    tpu.vector_store %arg18[%c0_47, %145, %c0_48], %144 {strides = array<i32>} : memref<8x4x32xf32, #tpu.memory_space<vmem>>, vector<8x1x32xf32>,
    %c4_i32 = arith.constant 4 : i32
    %c0_49 = arith.constant 0 : index
    %c0_50 = arith.constant 0 : index
    %147 = vector.load %arg15[%c0_49, %c0_50] : memref<8x32xf32, #tpu.memory_space<vmem>>, vector<8x32xf32>
    tpu.vector_store %arg15[%c0_49, %c0_50], %143 {strides = array<i32>} : memref<8x32xf32, #tpu.memory_space<vmem>>, vector<8x32xf32>,
    %c0_51 = arith.constant 0 : index
    %c0_52 = arith.constant 0 : index
    %148 = vector.load %arg16[%c0_51, %c0_52] : memref<8x32xf32, #tpu.memory_space<vmem>>, vector<8x32xf32>
    tpu.vector_store %arg16[%c0_51, %c0_52], %141 {strides = array<i32>} : memref<8x32xf32, #tpu.memory_space<vmem>>, vector<8x32xf32>,
    %c0_53 = arith.constant 0 : index
    %c0_54 = arith.constant 0 : index
    %c0_55 = arith.constant 0 : index
    %149 = vector.load %arg18[%c0_53, %c0_54, %c0_55] : memref<8x4x32xf32, #tpu.memory_space<vmem>>, vector<8x4x32xf32>
    %150 = vector.shape_cast %149 : vector<8x4x32xf32> to vector<32x32xf32>
    %c0_56 = arith.constant 0 : index
    %c0_57 = arith.constant 0 : index
    %151 = vector.load %arg9[%c0_56, %c0_57] : memref<32x128xf32, #tpu.memory_space<vmem>>, vector<32x128xf32>
    %cst_58 = arith.constant dense<0.000000e+00> : vector<32x128xf32>
    %152 = tpu.matmul %150, %151, %cst_58 {dimension_numbers = #tpu.dot_dimension_numbers<[1], [0], [0], [1], [0, 0, 1, 1], [], []>} : vector<32x32xf32>, vector<32x128xf32>, vector<32x128xf32> -> vector<32x128xf32>
    %c0_59 = arith.constant 0 : index
    %c0_60 = arith.constant 0 : index
    %153 = vector.load %arg10[%c0_59, %c0_60] : memref<1x128xf32, #tpu.memory_space<vmem>>, vector<1x128xf32>
    %154 = vector.broadcast %153 : vector<1x128xf32> to vector<32x128xf32>
    %155 = arith.addf %152, %154 : vector<32x128xf32>
    %156 = vector.shape_cast %155 : vector<32x128xf32> to vector<8x4x128xf32>
    %c0_61 = arith.constant 0 : index
    %c0_62 = arith.constant 0 : index
    %c0_63 = arith.constant 0 : index
    %157 = vector.load %arg11[%c0_61, %c0_62, %c0_63] : memref<8x4x128xf32, #tpu.memory_space<vmem>>, vector<8x4x128xf32>
    tpu.vector_store %arg11[%c0_61, %c0_62, %c0_63], %156 {strides = array<i32>} : memref<8x4x128xf32, #tpu.memory_space<vmem>>, vector<8x4x128xf32>,
    %c0_64 = arith.constant 0 : index
    %c0_65 = arith.constant 0 : index
    %c0_66 = arith.constant 0 : index
    %158 = vector.load %arg3[%c0_64, %c0_65, %c0_66] : memref<8x128x32xf32, #tpu.memory_space<vmem>>, vector<8x128x32xf32>
    "tpu.trace_start"() <{level = 10 : i32, message = "bth,bsh->bts"}> : () -> ()
    %cst_67 = arith.constant dense<0.000000e+00> : vector<8x4x128xf32>
    %159 = tpu.matmul %149, %158, %cst_67 {dimension_numbers = #tpu.dot_dimension_numbers<[2], [2], [1], [1], [0, 0, 0, 1, 1, 1], [0], [0]>} : vector<8x4x32xf32>, vector<8x128x32xf32>, vector<8x4x128xf32> -> vector<8x4x128xf32>
    "tpu.trace_stop"() : () -> ()
    %160 = tpu.iota {dimensions = array<i32: 2>} : vector<8x4x128xi32>
    %c8_i32 = arith.constant 8 : i32
    %161 = vector.broadcast %c8_i32 : i32 to vector<8x4x128xi32>
    %162 = arith.cmpi slt, %160, %161 : vector<8x4x128xi32>
    %cst_68 = arith.constant -1.000000e+30 : f32
    %163 = vector.broadcast %cst_68 : f32 to vector<8x4x128xf32>
    %164 = arith.select %162, %159, %163 : vector<8x4x128xi1>, vector<8x4x128xf32>
    %cst_69 = arith.constant dense<0xFF800000> : vector<8x4xf32>
    %165 = vector.multi_reduction <maximumf>, %164, %cst_69 [2] : vector<8x4x128xf32> to vector<8x4xf32>
    %166 = vector.shape_cast %165 : vector<8x4xf32> to vector<8x4x1xf32>
    %167 = vector.broadcast %166 : vector<8x4x1xf32> to vector<8x4x128xf32>
    %168 = arith.subf %164, %167 : vector<8x4x128xf32>
    %169 = math.exp %168 : vector<8x4x128xf32>
    %cst_70 = arith.constant dense<0.000000e+00> : vector<8x4xf32>
    %170 = vector.multi_reduction <add>, %169, %cst_70 [2] : vector<8x4x128xf32> to vector<8x4xf32>
    %171 = vector.shape_cast %170 : vector<8x4xf32> to vector<8x4x1xf32>
    %172 = tpu.reciprocal %171 : vector<8x4x1xf32> -> vector<8x4x1xf32>
    %173 = vector.broadcast %172 : vector<8x4x1xf32> to vector<8x4x128xf32>
    %174 = arith.mulf %169, %173 : vector<8x4x128xf32>
    %c0_71 = arith.constant 0 : index
    %c0_72 = arith.constant 0 : index
    %c0_73 = arith.constant 0 : index
    %175 = vector.load %arg12[%c0_71, %c0_72, %c0_73] : memref<8x4x128xf32, #tpu.memory_space<vmem>>, vector<8x4x128xf32>
    tpu.vector_store %arg12[%c0_71, %c0_72, %c0_73], %174 {strides = array<i32>} : memref<8x4x128xf32, #tpu.memory_space<vmem>>, vector<8x4x128xf32>,
    %c0_i32_74 = arith.constant 0 : i32
    %176 = arith.cmpi eq, %arg1, %c0_i32_74 : i32
    %177 = arith.extui %176 : i1 to i32
    %c0_i32_75 = arith.constant 0 : i32
    %178 = arith.cmpi ne, %177, %c0_i32_75 : i32
    scf.if %178 {
      %c0_76 = arith.constant 0 : index
      %c0_77 = arith.constant 0 : index
      %179 = vector.load %arg15[%c0_76, %c0_77] : memref<8x32xf32, #tpu.memory_space<vmem>>, vector<8x32xf32>
      %c0_78 = arith.constant 0 : index
      %c0_79 = arith.constant 0 : index
      %180 = vector.load %arg13[%c0_78, %c0_79] : memref<8x32xf32, #tpu.memory_space<vmem>>, vector<8x32xf32>
      tpu.vector_store %arg13[%c0_78, %c0_79], %179 {strides = array<i32>} : memref<8x32xf32, #tpu.memory_space<vmem>>, vector<8x32xf32>,
      %c0_80 = arith.constant 0 : index
      %c0_81 = arith.constant 0 : index
      %181 = vector.load %arg16[%c0_80, %c0_81] : memref<8x32xf32, #tpu.memory_space<vmem>>, vector<8x32xf32>
      %c0_82 = arith.constant 0 : index
      %c0_83 = arith.constant 0 : index
      %182 = vector.load %arg14[%c0_82, %c0_83] : memref<8x32xf32, #tpu.memory_space<vmem>>, vector<8x32xf32>
      tpu.vector_store %arg14[%c0_82, %c0_83], %181 {strides = array<i32>} : memref<8x32xf32, #tpu.memory_space<vmem>>, vector<8x32xf32>,
    } else {
    }
    return
  }
  func.func @transform_0(%arg0: i32, %arg1: i32) -> (i32, i32, i32) {
    %c0_i32 = arith.constant 0 : i32
    %c0_i32_0 = arith.constant 0 : i32
    return %arg1, %arg0, %c0_i32 : i32, i32, i32
  }
  func.func @transform_1(%arg0: i32, %arg1: i32) -> (i32, i32, i32) {
    %c0_i32 = arith.constant 0 : i32
    %c0_i32_0 = arith.constant 0 : i32
    %c0_i32_1 = arith.constant 0 : i32
    return %arg0, %c0_i32, %c0_i32_0 : i32, i32, i32
  }
  func.func @transform_2(%arg0: i32, %arg1: i32) -> (i32, i32) {
    %c0_i32 = arith.constant 0 : i32
    %c0_i32_0 = arith.constant 0 : i32
    return %arg0, %c0_i32 : i32, i32
  }
  func.func @transform_3(%arg0: i32, %arg1: i32) -> (i32, i32) {
    %c0_i32 = arith.constant 0 : i32
    %c0_i32_0 = arith.constant 0 : i32
    return %arg0, %c0_i32 : i32, i32
  }
  func.func @transform_4(%arg0: i32, %arg1: i32) -> (i32, i32) {
    %c0_i32 = arith.constant 0 : i32
    %c0_i32_0 = arith.constant 0 : i32
    %c0_i32_1 = arith.constant 0 : i32
    return %c0_i32, %c0_i32_0 : i32, i32
  }
  func.func @transform_5(%arg0: i32, %arg1: i32) -> (i32, i32) {
    %c0_i32 = arith.constant 0 : i32
    %c0_i32_0 = arith.constant 0 : i32
    %c0_i32_1 = arith.constant 0 : i32
    return %c0_i32, %c0_i32_0 : i32, i32
  }
  func.func @transform_6(%arg0: i32, %arg1: i32) -> (i32, i32) {
    %c0_i32 = arith.constant 0 : i32
    %c0_i32_0 = arith.constant 0 : i32
    %c0_i32_1 = arith.constant 0 : i32
    return %c0_i32, %c0_i32_0 : i32, i32
  }
  func.func @transform_7(%arg0: i32, %arg1: i32) -> (i32, i32) {
    %c0_i32 = arith.constant 0 : i32
    %c0_i32_0 = arith.constant 0 : i32
    %c0_i32_1 = arith.constant 0 : i32
    return %c0_i32, %c0_i32_0 : i32, i32
  }
  func.func @transform_8(%arg0: i32, %arg1: i32) -> (i32, i32) {
    %c0_i32 = arith.constant 0 : i32
    %c0_i32_0 = arith.constant 0 : i32
    %c0_i32_1 = arith.constant 0 : i32
    return %c0_i32, %c0_i32_0 : i32, i32
  }
  func.func @transform_9(%arg0: i32, %arg1: i32) -> (i32, i32, i32) {
    %c0_i32 = arith.constant 0 : i32
    %c0_i32_0 = arith.constant 0 : i32
    return %arg0, %arg1, %c0_i32 : i32, i32, i32
  }
  func.func @transform_10(%arg0: i32, %arg1: i32) -> (i32, i32, i32) {
    %c0_i32 = arith.constant 0 : i32
    %c0_i32_0 = arith.constant 0 : i32
    return %arg0, %arg1, %c0_i32 : i32, i32, i32
  }
  func.func @transform_11(%arg0: i32, %arg1: i32) -> (i32, i32) {
    %c0_i32 = arith.constant 0 : i32
    %c0_i32_0 = arith.constant 0 : i32
    return %arg0, %c0_i32 : i32, i32
  }
  func.func @transform_12(%arg0: i32, %arg1: i32) -> (i32, i32) {
    %c0_i32 = arith.constant 0 : i32
    %c0_i32_0 = arith.constant 0 : i32
    return %arg0, %c0_i32 : i32, i32
  }
}

</mosaic_0001>

<bundles_post_ra>
// kernel: tpu_custom_call.1
= control target key start
LH: loop header
LB: loop body
LE: loop exit
PB: predicated region body
PF: predicated region fallthrough
CT: control target
= control target key end

     0   :  { %18 = vsyncpa [#allocation7], 0  ;;  %s4682_s0 = inlined_call_operand.vmem [shape: f32[4,8,8], index: 0, kind: input, shape index: {}]   ;;  %s4683_s1 = inlined_call_operand.vmem [shape: f32[8,128,32], index: 1, kind: input, shape index: {}]   ;;  %s4684_s2 = inlined_call_operand.vmem [shape: f32[8,32], index: 2, kind: input, shape index: {}]   ;;  %s4685_s3 = inlined_call_operand.vmem [shape: f32[8,32], index: 3, kind: input, shape index: {}]   ;;  %s4686_s4 = inlined_call_operand.vmem [shape: f32[8,128], index: 4, kind: input, shape index: {}]   ;;  %s4687_s5 = inlined_call_operand.vmem [shape: f32[32,128], index: 5, kind: input, shape index: {}]   ;;  %s4688_s6 = inlined_call_operand.vmem [shape: f32[1,128], index: 6, kind: input, shape index: {}]   ;;  %s4689_s7 = inlined_call_operand.vmem [shape: f32[32,128], index: 7, kind: input, shape index: {}]   ;;  %s4690_s8 = inlined_call_operand.vmem [shape: f32[1,128], index: 8, kind: input, shape index: {}]   ;;  %s4691_s9 = inlined_call_operand.hbm [shape: f32[8,4,128], index: 9, kind: output, shape index: {0}]   ;;  %s4692_s10 = inlined_call_operand.hbm [shape: f32[8,4,128], index: 10, kind: output, shape index: {1}]   ;;  %s4693_s11 = inlined_call_operand.hbm [shape: f32[8,32], index: 11, kind: output, shape index: {2}]   ;;  %s4694_s12 = inlined_call_operand.hbm [shape: f32[8,32], index: 12, kind: output, shape index: {3}]  }
   0x1   :  { %19 = vsyncpa [#allocation9], 0  ;;  %v162_v0 = vld [vmem:[%s4687_s5] sm:$0xff]  ;;  %v163_v1 = vld [vmem:[%s4687_s5 + $0x8] sm:$0xff]  ;;  %vm60_vm0 = vcmask 64512   ;;  %v3578_v3 = vmov 0.0|0.0  }
   0x2   :  { %v52_v2 = vld [vmem:[%s4686_s4] sm:$0xff]  ;;  %3116 = vmatprep.subr.bf16.mxu1 %v3578_v3  ;;  %v3665_v4 = vpack.c.bf16 %v163_v1, %v162_v0  ;;  %v49_v6 = vld [vmem:[%s4682_s0 + $0x8] sm:$0xff]  ;;  %v164_v7 = vld [vmem:[%s4687_s5 + $0x10] sm:$0xff]  ;;  %vm44_vm1 = vcmask 261120  }
   0x3   :  { %2770 = vmatprep.subr.mxu0 %v52_v2  ;;  %v48_v5 = vld [vmem:[%s4682_s0] sm:$0xff]  ;;  %v165_v8 = vld [vmem:[%s4687_s5 + $0x18] sm:$0xff] }
   0x4   :  { %2771 = vmatpush3.msra.mxu0 %v52_v2  ;;  %2772 = vmatprep.mubr.msk.f32.mxu0 %vm60_vm0, %v48_v5  ;;  %v43_v9 = vld [vmem:[%s4684_s2] sm:$0xff]  ;;  %v3685_v10 = vpack.c.bf16 %v165_v8, %v164_v7 }
   0x5   :  { %3118 = vmatpush3.bf16.msra.mxu1 %v3665_v4  ;;  %2773 = vmatmul.mubr.msk.f32.vlgmr.msra.gmra.mrb[0].mxu0 %vm60_vm0, %v49_v6  ;;  %45 = vst.msk [vmem:[#allocation2] sm:$0xff] %vm44_vm1, %v43_v9 }
   0x6   :  { %20 = vsyncpa [#allocation12], 0  ;;  %3119 = vmatprep.subr.bf16.mxu1 %v3578_v3  ;;  %vm3579_vm2 = vmmov 0   ;;  %v3580_v11 = vmov 0.0   ;;  %3122 = vmatprep.subr.bf16.mxu0 %v3578_v3  ;;  %v46_v13 = vld [vmem:[%s4685_s3] sm:$0xff]  ;;  %s3581_s20 = smov 64  }
   0x7   :  { %2786 = vmatprep.mubr.msk.f32.mxu1 %vm3579_vm2, %v3580_v11  ;;  %3124 = vmatpush3.bf16.msra.mxu0 %v3665_v4  ;;  %47 = vst.msk [vmem:[#allocation3] sm:$0xff] %vm44_vm1, %v46_v13  ;;  %v3711_v16 = vld [vmem:[%s4688_s6] ss:$0 sm:$0xff]  ;;  %s3582_s3 = smov 32   ;;  %v50_v33 = vld [vmem:[%s4682_s0 + $0x10] sm:$0xff]  ;;  %v51_v34 = vld [vmem:[%s4682_s0 + $0x18] sm:$0xff] }
   0x8   :  { %3125 = vmatprep.subr.bf16.mxu0 %v3578_v3  ;;  %2775 = vmatprep.mubr.msk.f32.mxu0 %vm60_vm0, %v50_v33  ;;  %vm378_vm3 = vcmask 253952   ;;  %vm3822_vm4 = vmpackc.low %vm44_vm1, %vm44_vm1  ;;  %vm2284_vm6 = vcmask 1043456  }
   0x9   :  { %3121 = vmatpush3.bf16.msra.mxu1 %v3685_v10  ;;  %2776 = vmatmul.mubr.msk.f32.gmra.mrb[2].mxu0 %vm60_vm0, %v51_v34 }
   0xa   :  { %3128 = vmatprep.subr.bf16.mxu1 %v3578_v3  ;;  %2797 = vmatprep.mubr.msk.f32.mxu0 %vm3579_vm2, %v3580_v11 }
   0xb   :  { %3127 = vmatpush3.bf16.msra.mxu0 %v3685_v10 }
   0xc   :  { %v166_v12 = vld [vmem:[#allocation2] sm:$0xff]  ;;  %3134 = vmatprep.subr.bf16.mxu0 %v3578_v3 }
   0xd   :  { %2787 = vmatmul.mubr.msk.f32.vlgmr.msra.gmra.mrb[0].mxu1 %vm44_vm1, %v166_v12 }
   0xe   :  { %3130 = vmatpush3.bf16.msra.mxu1 %v3665_v4  ;;  %2808 = vmatprep.mubr.msk.f32.mxu1 %vm3579_vm2, %v3580_v11  ;;  %v167_v22 = vld [vmem:[#allocation3] sm:$0xff] }
   0xf   :  { %3131 = vmatprep.subr.bf16.mxu1 %v3578_v3 }
  0x12   :  { %3133 = vmatpush3.bf16.msra.mxu1 %v3685_v10 }
  0xd8   :  { %v2774_v14 = vpop.f32.mrb[0].mxu0 }
  0xd9   :  { %v139_v15 = vpop.f32.mrb[1].mxu0  ;;  %v145_v41 = vadd.f32 %v2774_v14, %v3711_v16 }
  0xda   :  { %v140_v17 = vadd.f32 %v3711_v16, %v139_v15 }
  0xdc   :  { %v3732_v38 = vpop.f32.mrb[2].mxu0 }
  0xdd   :  { %v149_v39 = vpop.f32.mrb[3].mxu0  ;;  %v155_v15 = vadd.f32 %v3732_v38, %v3711_v16 }
  0xde   :  { %v150_v59 = vadd.f32 %v3711_v16, %v149_v39 }
  0xe0   :  { %v239_v18 = vpop.f32.mrb[0].mxu1 }
  0xe1   :  { %v243_v19 = vadd.f32 %v239_v18, %v140_v17  ;;  %v2788_v20 = vpop.f32.mrb[1].mxu1 }
  0xe3   :  { %3420 = vtanh.f32 %v243_v19  ;;  %v2453_v23 = vmul.f32 -1.442695, %v243_v19 }
  0xe5   :  { %3422 = vpow2.f32 %v2453_v23  ;;  %v3583_v23 = vmov 1966171168  }
  0xed   :  { %v3421_v21 = vpop.eup %3420 }
  0xee   :  { %257 = vrot.lane.b32.xlu0 %v3421_v21, %s3581_s20 }
  0xef   :  { %v3423_v24 = vpop.eup %3422 }
  0xf0   :  { %v247_v25 = vadd.f32 1.0, %v3423_v24  ;;  %v275_v24 = vunpack.c.l.s4 %v3583_v23  ;;  %v1190_v23 = vld [vmem:[%s4683_s1 + $0x28] sm:$0xff] }
  0xf2   :  { %252 = vrot.lane.b32.xlu0 %v167_v22, %s3582_s3  ;;  %3424 = vrcp.f32 %v247_v25  ;;  %v277_v25 = vlaneseq }
  0xfc   :  { %v3425_v26 = vpop.eup %3424 }
 0x160   :  { %v258_v27 = vpop.permute.xlu0 %257 }
 0x161   :  { %v260_v28 = vmul.f32 %v3425_v26, %v258_v27  ;;  %v276_v27 = vunpack.c.0.s8 %v275_v24 }
 0x163   :  { %262 = vrot.lane.b32.xlu1 %v260_v28, %s3582_s3  ;;  %v278_v28 = vshrl.u32 %v277_v25, 7 }
 0x164   :  { %v253_v29 = vpop.permute.xlu0 %252 }
 0x165   :  { %v255_v30 = vmul.f32 %v3425_v26, %v253_v29  ;;  %v3765_v29 = vsub.s32 %v276_v27, %v278_v28  ;;  %v1192_v27 = vld [vmem:[%s4683_s1 + $0x38] sm:$0xff] }
 0x1d5   :  { %v263_v31 = vpop.permute.xlu1 %262 }
 0x1d6   :  { %v265_v32 = vadd.f32 %v263_v31, %v255_v30 }
 0x1d8   :  { %3426 = vtanh.f32 %v265_v32 }
 0x1e2   :  { %v3427_v35 = vpop.eup %3426 }
 0x1e3   :  { %268 = vrot.lane.b32.xlu1 %v3427_v35, %s3581_s20 }
 0x255   :  { %v269_v36 = vpop.permute.xlu1 %268 }
 0x256   :  { %v3728_v37 = vmul.f32 %v3425_v26, %v269_v36 }
 0x258   :  { %389 = vrot.lane.b32.xlu0 %v3728_v37, %s3582_s3  ;;  %v280_v16 = vrot.slane %v3728_v37, %v3765_v29 }
 0x25a   :  { %v296_v35 = vrot.slane %v280_v16, %v3765_v29 }
 0x2ca   :  { %v390_v40 = vpop.permute.xlu0 %389 }
 0x2cb   :  { %2798 = vmatmul.mubr.msk.f32.vlgmr.msra.gmra.mrb[4].mxu0 %vm44_vm1, %v390_v40 }
 0x2cc   :  { %3136 = vmatpush3.bf16.msra.mxu0 %v3665_v4  ;;  %2819 = vmatprep.mubr.msk.f32.mxu0 %vm3579_vm2, %v3580_v11 }
 0x2cd   :  { %3137 = vmatprep.subr.bf16.mxu0 %v3578_v3 }
 0x2d0   :  { %3139 = vmatpush3.bf16.msra.mxu0 %v3685_v10 }
 0x2d1   :  { %3148 = vmatprep.subr.bf16.mxu0 %v3578_v3 }
 0x39e   :  { %v459_v42 = vpop.f32.mrb[4].mxu0 }
 0x39f   :  { %v463_v43 = vadd.f32 %v459_v42, %v145_v41  ;;  %v2799_v44 = vpop.f32.mrb[5].mxu0 }
 0x3a1   :  { %3428 = vtanh.f32 %v463_v43  ;;  %v2455_v46 = vmul.f32 -1.442695, %v463_v43  ;;  %v318_v43 = vcombine.high %v296_v35, %v296_v35 }
 0x3a3   :  { %3430 = vpow2.f32 %v2455_v46 }
 0x3ab   :  { %v3429_v45 = vpop.eup %3428 }
 0x3ac   :  { %473 = vrot.lane.b32.xlu1 %v3429_v45, %s3581_s20 }
 0x3ad   :  { %v3431_v47 = vpop.eup %3430 }
 0x3ae   :  { %v467_v48 = vadd.f32 1.0, %v3431_v47 }
 0x3b0   :  { %3432 = vrcp.f32 %v467_v48 }
 0x3ba   :  { %v3433_v49 = vpop.eup %3432 }
 0x3bb   :  { %v471_v52 = vmul.f32 %v3433_v49, %v265_v32  ;;  %v3771_v32 = vsub.s32 0, %v278_v28 }
 0x3bd   :  { %v325_v38 = vrot.slane %v296_v35, %v3771_v32  ;;  %v333_v44 = vrot.slane %v318_v43, %v3771_v32  ;;  %v1196_v35 = vld [vmem:[%s4683_s1 + $0x58] sm:$0xff] }
 0x41e   :  { %v474_v50 = vpop.permute.xlu1 %473 }
 0x41f   :  { %v476_v51 = vmul.f32 %v3433_v49, %v474_v50 }
 0x421   :  { %478 = vrot.lane.b32.xlu0 %v476_v51, %s3582_s3 }
 0x493   :  { %v479_v53 = vpop.permute.xlu0 %478 }
 0x494   :  { %v481_v54 = vadd.f32 %v479_v53, %v471_v52  ;;  %v288_v53 = vcombine.high %v280_v16, %v280_v16  ;;  %v1193_v16 = vld [vmem:[%s4683_s1 + $0x40] sm:$0xff] }
 0x496   :  { %3434 = vtanh.f32 %v481_v54 }
 0x4a0   :  { %v3435_v55 = vpop.eup %3434 }
 0x4a1   :  { %484 = vrot.lane.b32.xlu1 %v3435_v55, %s3581_s20 }
 0x513   :  { %v485_v56 = vpop.permute.xlu1 %484 }
 0x514   :  { %v3745_v57 = vmul.f32 %v3433_v49, %v485_v56 }
 0x516   :  { %604 = vrot.lane.b32.xlu0 %v3745_v57, %s3582_s3  ;;  %v496_v33 = vrot.slane %v3745_v57, %v3765_v29 }
 0x518   :  { %v512_v39 = vrot.slane %v496_v33, %v3765_v29  ;;  %v504_v55 = vcombine.high %v496_v33, %v496_v33 }
 0x51a   :  { %v541_v40 = vrot.slane %v512_v39, %v3771_v32  ;;  %v534_v45 = vcombine.high %v512_v39, %v512_v39  ;;  %v1198_v39 = vld [vmem:[%s4683_s1 + $0x68] sm:$0xff] }
 0x51c   :  { %v549_v46 = vrot.slane %v534_v45, %v3771_v32  ;;  %v1050_v45 = vld [vmem:[%s4689_s7 + $0x8] sm:$0xff] }
 0x588   :  { %v605_v58 = vpop.permute.xlu0 %604 }
 0x589   :  { %2809 = vmatmul.mubr.msk.f32.vlgmr.msra.gmra.mrb[2].mxu1 %vm44_vm1, %v605_v58  ;;  %v310_v58 = vrot.slane %v288_v53, %v3765_v29 }
 0x65c   :  { %v674_v60 = vpop.f32.mrb[2].mxu1 }
 0x65d   :  { %v678_v61 = vadd.f32 %v674_v60, %v150_v59  ;;  %v2810_v62 = vpop.f32.mrb[3].mxu1 }
 0x65e   :  { %v329_v62 = vrot.slane %v310_v58, %v3771_v32 }
 0x65f   :  { %3436 = vtanh.f32 %v678_v61  ;;  %v2457_v0 = vmul.f32 -1.442695, %v678_v61 }
 0x661   :  { %3438 = vpow2.f32 %v2457_v0 }
 0x669   :  { %v3437_v63 = vpop.eup %3436 }
 0x66a   :  { %688 = vrot.lane.b32.xlu1 %v3437_v63, %s3581_s20  ;;  %v526_v63 = vrot.slane %v504_v55, %v3765_v29 }
 0x66b   :  { %v3439_v1 = vpop.eup %3438 }
 0x66c   :  { %v682_v2 = vadd.f32 1.0, %v3439_v1  ;;  %v545_v1 = vrot.slane %v526_v63, %v3771_v32 }
 0x66e   :  { %3440 = vrcp.f32 %v682_v2 }
 0x678   :  { %v3441_v4 = vpop.eup %3440 }
 0x679   :  { %v686_v7 = vmul.f32 %v3441_v4, %v481_v54 }
 0x6dc   :  { %v689_v5 = vpop.permute.xlu1 %688 }
 0x6dd   :  { %v691_v6 = vmul.f32 %v3441_v4, %v689_v5 }
 0x6df   :  { %693 = vrot.lane.b32.xlu0 %v691_v6, %s3582_s3  ;;  %v320_v6 = vcombine.high %v310_v58, %v310_v58 }
 0x751   :  { %v694_v8 = vpop.permute.xlu0 %693 }
 0x752   :  { %v696_v9 = vadd.f32 %v694_v8, %v686_v7  ;;  %v337_v7 = vrot.slane %v320_v6, %v3771_v32  ;;  %v536_v8 = vcombine.high %v526_v63, %v526_v63 }
 0x754   :  { %3442 = vtanh.f32 %v696_v9 }
 0x75e   :  { %v3443_v10 = vpop.eup %3442 }
 0x75f   :  { %699 = vrot.lane.b32.xlu1 %v3443_v10, %s3581_s20 }
 0x7d1   :  { %v700_v12 = vpop.permute.xlu1 %699 }
 0x7d2   :  { %v3754_v13 = vmul.f32 %v3441_v4, %v700_v12 }
 0x7d4   :  { %819 = vrot.lane.b32.xlu0 %v3754_v13, %s3582_s3  ;;  %v711_v36 = vrot.slane %v3754_v13, %v3765_v29 }
 0x7d6   :  { %v727_v41 = vrot.slane %v711_v36, %v3765_v29  ;;  %v719_v60 = vcombine.high %v711_v36, %v711_v36 }
 0x7d8   :  { %v756_v42 = vrot.slane %v727_v41, %v3771_v32  ;;  %v749_v47 = vcombine.high %v727_v41, %v727_v41  ;;  %v741_v2 = vrot.slane %v719_v60, %v3765_v29  ;;  %v1199_v41 = vld [vmem:[%s4683_s1 + $0x70] sm:$0xff] }
 0x7da   :  { %v764_v48 = vrot.slane %v749_v47, %v3771_v32  ;;  %v760_v5 = vrot.slane %v741_v2, %v3771_v32  ;;  %v751_v10 = vcombine.high %v741_v2, %v741_v2  ;;  %v273_v47 = vcombine.high %v3728_v37, %v3728_v37 }
 0x7dc   :  { %v768_v12 = vrot.slane %v751_v10, %v3771_v32  ;;  %v287_v37 = vrot.slane %v273_v47, %v3765_v29 }
 0x7de   :  { %v289_v63 = vcombine.high %v287_v37, %v287_v37 }
 0x846   :  { %v820_v14 = vpop.permute.xlu0 %819 }
 0x847   :  { %2820 = vmatmul.mubr.msk.f32.vlgmr.msra.gmra.mrb[6].mxu0 %vm44_vm1, %v820_v14 }
 0x848   :  { %2868 = vmatprep.mubr.msk.f32.mxu0 %vm3579_vm2, %v3580_v11 }
 0x91a   :  { %v889_v17 = vpop.f32.mrb[6].mxu0 }
 0x91b   :  { %v893_v18 = vadd.f32 %v889_v17, %v155_v15  ;;  %v2821_v19 = vpop.f32.mrb[7].mxu0  ;;  %v1185_v15 = vld [vmem:[%s4683_s1] sm:$0xff]  ;;  %v1186_v17 = vld [vmem:[%s4683_s1 + $0x8] sm:$0xff] }
 0x91c   :  { %v1187_v19 = vld [vmem:[%s4683_s1 + $0x10] sm:$0xff] }
 0x91d   :  { %3444 = vtanh.f32 %v893_v18  ;;  %v2459_v21 = vmul.f32 -1.442695, %v893_v18  ;;  %v3149_v18 = vpack.c.bf16 %v1186_v17, %v1185_v15 }
 0x91f   :  { %3446 = vpow2.f32 %v2459_v21  ;;  %3151 = vmatpush3.bf16.xpose.msk.msra.mxu0 %vm3822_vm4, %v3149_v18 }
 0x920   :  { %3152 = vmatprep.subr.bf16.mxu0 %v3578_v3 }
 0x927   :  { %v3445_v20 = vpop.eup %3444 }
 0x928   :  { %903 = vrot.lane.b32.xlu1 %v3445_v20, %s3581_s20  ;;  %v1188_v20 = vld [vmem:[%s4683_s1 + $0x18] sm:$0xff] }
 0x929   :  { %v3447_v22 = vpop.eup %3446  ;;  %v3153_v21 = vpack.c.bf16 %v1188_v20, %v1187_v19 }
 0x92a   :  { %v897_v26 = vadd.f32 1.0, %v3447_v22  ;;  %v1189_v22 = vld [vmem:[%s4683_s1 + $0x20] sm:$0xff] }
 0x92b   :  { %3155 = vmatpush3.bf16.xpose.msk.msra.mxu0 %vm3822_vm4, %v3153_v21  ;;  %v3157_v24 = vpack.c.bf16 %v1190_v23, %v1189_v22 }
 0x92c   :  { %3448 = vrcp.f32 %v897_v26  ;;  %3156 = vmatprep.subr.bf16.mxu0 %v3578_v3  ;;  %v1191_v26 = vld [vmem:[%s4683_s1 + $0x30] sm:$0xff] }
 0x92d   :  { %v3161_v28 = vpack.c.bf16 %v1192_v27, %v1191_v26 }
 0x933   :  { %3159 = vmatpush3.bf16.xpose.msk.msra.mxu0 %vm3822_vm4, %v3157_v24 }
 0x934   :  { %3160 = vmatprep.subr.bf16.mxu0 %v3578_v3 }
 0x936   :  { %v3769_v30 = vpop.eup %3448 }
 0x937   :  { %v901_v49 = vmul.f32 %v3769_v30, %v696_v9  ;;  %v553_v9 = vrot.slane %v536_v8, %v3771_v32  ;;  %v317_v8 = vrot.slane %v289_v63, %v3765_v29 }
 0x939   :  { %v345_v18 = vrot.slane %v317_v8, %v3771_v32 }
 0x93b   :  { %3163 = vmatpush3.bf16.xpose.msk.msra.mxu0 %vm3822_vm4, %v3161_v28 }
 0x93c   :  { %3164 = vmatprep.subr.bf16.mxu0 %v3578_v3 }
 0x99a   :  { %v904_v31 = vpop.permute.xlu1 %903 }
 0x99b   :  { %v906_v34 = vmul.f32 %v3769_v30, %v904_v31  ;;  %v1194_v31 = vld [vmem:[%s4683_s1 + $0x48] sm:$0xff] }
 0x99c   :  { %v3165_v33 = vpack.c.bf16 %v1194_v31, %v1193_v16 }
 0x99d   :  { %908 = vrot.lane.b32.xlu0 %v906_v34, %s3582_s3  ;;  %v1195_v34 = vld [vmem:[%s4683_s1 + $0x50] sm:$0xff] }
 0x99e   :  { %3167 = vmatpush3.bf16.xpose.msk.msra.mxu0 %vm3822_vm4, %v3165_v33  ;;  %v3169_v36 = vpack.c.bf16 %v1196_v35, %v1195_v34  ;;  %v321_v34 = vcombine.high %v317_v8, %v317_v8 }
 0x99f   :  { %3168 = vmatprep.subr.bf16.mxu0 %v3578_v3 }
 0x9a1   :  { %354 = vrot.lane.b32.xlu0 %v325_v38, %s3582_s3  ;;  %v1197_v38 = vld [vmem:[%s4683_s1 + $0x60] sm:$0xff] }
 0x9a5   :  { %570 = vrot.lane.b32.xlu0 %v541_v40, %s3582_s3  ;;  %v3173_v40 = vpack.c.bf16 %v1198_v39, %v1197_v38  ;;  %v353_v38 = vrot.slane %v321_v34, %v3771_v32  ;;  %v1224_v34 = vld [vmem:[%s4683_s1 + $0x138] sm:$0xff] }
 0x9a6   :  { %3171 = vmatpush3.bf16.xpose.msk.msra.mxu0 %vm3822_vm4, %v3169_v36 }
 0x9a7   :  { %3172 = vmatprep.subr.bf16.mxu0 %v3578_v3 }
 0x9a9   :  { %785 = vrot.lane.b32.xlu0 %v756_v42, %s3582_s3  ;;  %v1200_v42 = vld [vmem:[%s4683_s1 + $0x78] sm:$0xff] }
 0x9aa   :  { %v3177_v43 = vpack.c.bf16 %v1200_v42, %v1199_v41 }
 0x9ad   :  { %358 = vrot.lane.b32.xlu0 %v333_v44, %s3582_s3  ;;  %v1049_v44 = vld [vmem:[%s4689_s7] sm:$0xff] }
 0x9ae   :  { %3175 = vmatpush3.bf16.xpose.msk.msra.mxu0 %vm3822_vm4, %v3173_v40 }
 0x9af   :  { %3176 = vmatprep.subr.bf16.mxu0 %v3578_v3 }
 0x9b1   :  { %574 = vrot.lane.b32.xlu0 %v549_v46, %s3582_s3  ;;  %v3140_v46 = vpack.c.bf16 %v1050_v45, %v1049_v44 }
 0x9b3   :  { %3141 = vmatprep.subr.bf16.mxu1 %v3140_v46 }
 0x9b4   :  { %3143 = vmatpush3.bf16.msra.mxu1 %v3140_v46 }
 0x9b5   :  { %789 = vrot.lane.b32.xlu0 %v764_v48, %s3582_s3 }
 0x9b6   :  { %3179 = vmatpush3.bf16.xpose.msk.msra.mxu0 %vm3822_vm4, %v3177_v43 }
 0x9b7   :  { %3212 = vmatprep.subr.bf16.mxu0 %v3578_v3 }
 0xa0f   :  { %v909_v50 = vpop.permute.xlu0 %908 }
 0xa10   :  { %v3795_v51 = vadd.f32 %v909_v50, %v901_v49  ;;  %v1051_v49 = vld [vmem:[%s4689_s7 + $0x10] sm:$0xff]  ;;  %v1052_v50 = vld [vmem:[%s4689_s7 + $0x18] sm:$0xff] }
 0xa11   :  { %v3144_v53 = vpack.c.bf16 %v1052_v50, %v1051_v49 }
 0xa12   :  { %3450 = vtanh.f32 %v3795_v51 }
 0xa13   :  { %v355_v52 = vpop.permute.xlu0 %354  ;;  %3145 = vmatprep.subr.bf16.mxu1 %v3144_v53 }
 0xa14   :  { %379 = vst.msk [vmem:[#allocation5] sm:$0x1] %vm378_vm3, %v355_v52  ;;  %3147 = vmatpush3.bf16.msra.mxu1 %v3144_v53 }
 0xa15   :  { %3180 = vmatprep.subr.bf16.mxu1 %v3578_v3 }
 0xa17   :  { %v571_v54 = vpop.permute.xlu0 %570 }
 0xa18   :  { %594 = vst.msk [vmem:[#allocation5 + $0x1] sm:$0x1] %vm378_vm3, %v571_v54 }
 0xa1b   :  { %v786_v56 = vpop.permute.xlu0 %785 }
 0xa1c   :  { %v3451_v59 = vpop.eup %3450  ;;  %809 = vst.msk [vmem:[#allocation5 + $0x2] sm:$0x1] %vm378_vm3, %v786_v56  ;;  %v489_v56 = vcombine.high %v3745_v57, %v3745_v57 }
 0xa1d   :  { %914 = vrot.lane.b32.xlu1 %v3451_v59, %s3581_s20 }
 0xa1f   :  { %v359_v61 = vpop.permute.xlu0 %358 }
 0xa20   :  { %381 = vst.msk [vmem:[#allocation5 + $0x8] sm:$0x1] %vm378_vm3, %v359_v61 }
 0xa21   :  { %356 = vrot.lane.b32.xlu1 %v329_v62, %s3582_s3 }
 0xa23   :  { %v575_v0 = vpop.permute.xlu0 %574 }
 0xa24   :  { %596 = vst.msk [vmem:[#allocation5 + $0x9] sm:$0x1] %vm378_vm3, %v575_v0  ;;  %v503_v0 = vrot.slane %v489_v56, %v3765_v29 }
 0xa25   :  { %572 = vrot.lane.b32.xlu1 %v545_v1, %s3582_s3  ;;  %v704_v1 = vcombine.high %v3754_v13, %v3754_v13 }
 0xa26   :  { %v519_v15 = vrot.slane %v503_v0, %v3765_v29 }
 0xa27   :  { %v790_v4 = vpop.permute.xlu0 %789 }
 0xa28   :  { %811 = vst.msk [vmem:[#allocation5 + $0xa] sm:$0x1] %vm378_vm3, %v790_v4  ;;  %v557_v22 = vrot.slane %v519_v15, %v3771_v32  ;;  %v535_v41 = vcombine.high %v519_v15, %v519_v15 }
 0xa29   :  { %787 = vrot.lane.b32.xlu1 %v760_v5, %s3582_s3  ;;  %v303_v5 = vrot.slane %v287_v37, %v3765_v29 }
 0xa2a   :  { %v565_v45 = vrot.slane %v535_v41, %v3771_v32 }
 0xa2b   :  { %v319_v36 = vcombine.high %v303_v5, %v303_v5 }
 0xa2d   :  { %360 = vrot.lane.b32.xlu1 %v337_v7, %s3582_s3  ;;  %v718_v7 = vrot.slane %v704_v1, %v3765_v29  ;;  %v349_v40 = vrot.slane %v319_v36, %v3771_v32  ;;  %v1201_v1 = vld [vmem:[%s4683_s1 + $0x80] sm:$0xff] }
 0xa2f   :  { %v720_v20 = vcombine.high %v718_v7, %v718_v7  ;;  %v734_v23 = vrot.slane %v718_v7, %v3765_v29 }
 0xa31   :  { %576 = vrot.lane.b32.xlu1 %v553_v9, %s3582_s3  ;;  %v505_v9 = vcombine.high %v503_v0, %v503_v0  ;;  %v748_v27 = vrot.slane %v720_v20, %v3765_v29  ;;  %v772_v28 = vrot.slane %v734_v23, %v3771_v32  ;;  %v750_v46 = vcombine.high %v734_v23, %v734_v23  ;;  %v1221_v20 = vld [vmem:[%s4683_s1 + $0x120] sm:$0xff] }
 0xa33   :  { %v533_v19 = vrot.slane %v505_v9, %v3765_v29  ;;  %v776_v33 = vrot.slane %v748_v27, %v3771_v32  ;;  %v752_v43 = vcombine.high %v748_v27, %v748_v27  ;;  %v780_v49 = vrot.slane %v750_v46, %v3771_v32 }
 0xa35   :  { %791 = vrot.lane.b32.xlu1 %v768_v12, %s3582_s3  ;;  %v341_v12 = vrot.slane %v303_v5, %v3771_v32  ;;  %v561_v26 = vrot.slane %v533_v19, %v3771_v32  ;;  %v537_v39 = vcombine.high %v533_v19, %v533_v19  ;;  %v784_v47 = vrot.slane %v752_v43, %v3771_v32  ;;  %v1220_v5 = vld [vmem:[%s4683_s1 + $0x118] sm:$0xff] }
 0xa36   :  { %v1204_v19 = vld [vmem:[%s4683_s1 + $0x98] sm:$0xff] }
 0xa37   :  { %v569_v42 = vrot.slane %v537_v39, %v3771_v32  ;;  %v1208_v43 = vld [vmem:[%s4683_s1 + $0xb8] sm:$0xff] }
 0xa8f   :  { %v915_v48 = vpop.permute.xlu1 %914 }
 0xa90   :  { %v3913_v52 = vmul.f32 %v3769_v30, %v915_v48 }
 0xa92   :  { %v926_v54 = vrot.slane %v3913_v52, %v3765_v29  ;;  %v919_v10 = vcombine.high %v3913_v52, %v3913_v52 }
 0xa93   :  { %v357_v55 = vpop.permute.xlu1 %356 }
 0xa94   :  { %v934_v58 = vcombine.high %v926_v54, %v926_v54  ;;  %380 = vst.msk [vmem:[#allocation5 + $0x4] sm:$0x1] %vm378_vm3, %v357_v55  ;;  %v942_v59 = vrot.slane %v926_v54, %v3765_v29  ;;  %v933_v21 = vrot.slane %v919_v10, %v3765_v29 }
 0xa96   :  { %v971_v30 = vrot.slane %v942_v59, %v3771_v32  ;;  %v956_v60 = vrot.slane %v934_v58, %v3765_v29  ;;  %v964_v61 = vcombine.high %v942_v59, %v942_v59  ;;  %v949_v16 = vrot.slane %v933_v21, %v3765_v29  ;;  %v1217_v58 = vld [vmem:[%s4683_s1 + $0x100] sm:$0xff]  ;;  %v1218_v59 = vld [vmem:[%s4683_s1 + $0x108] sm:$0xff] }
 0xa97   :  { %v573_v62 = vpop.permute.xlu1 %572  ;;  %v935_v44 = vcombine.high %v933_v21, %v933_v21  ;;  %v1222_v21 = vld [vmem:[%s4683_s1 + $0x128] sm:$0xff] }
 0xa98   :  { %595 = vst.msk [vmem:[#allocation5 + $0x5] sm:$0x1] %vm378_vm3, %v573_v62  ;;  %1000 = vrot.lane.b32.xlu0 %v971_v30, %s3582_s3  ;;  %v975_v57 = vrot.slane %v956_v60, %v3771_v32  ;;  %v966_v2 = vcombine.high %v956_v60, %v956_v60  ;;  %v979_v4 = vrot.slane %v964_v61, %v3771_v32 }
 0xa99   :  { %v987_v35 = vrot.slane %v949_v16, %v3771_v32  ;;  %v963_v48 = vrot.slane %v935_v44, %v3765_v29  ;;  %v965_v50 = vcombine.high %v949_v16, %v949_v16  ;;  %v3213_v60 = vpack.c.bf16 %v1218_v59, %v1217_v58  ;;  %v1205_v16 = vld [vmem:[%s4683_s1 + $0xa0] sm:$0xff] }
 0xa9a   :  { %1002 = vrot.lane.b32.xlu1 %v975_v57, %s3582_s3  ;;  %v983_v13 = vrot.slane %v966_v2, %v3771_v32  ;;  %v1202_v2 = vld [vmem:[%s4683_s1 + $0x88] sm:$0xff]  ;;  %v1225_v44 = vld [vmem:[%s4683_s1 + $0x140] sm:$0xff] }
 0xa9b   :  { %v788_v6 = vpop.permute.xlu1 %787  ;;  %v991_v53 = vrot.slane %v963_v48, %v3771_v32  ;;  %v967_v54 = vcombine.high %v963_v48, %v963_v48  ;;  %v995_v37 = vrot.slane %v965_v50, %v3771_v32  ;;  %v3181_v9 = vpack.c.bf16 %v1202_v2, %v1201_v1  ;;  %v1230_v1 = vld [vmem:[%s4683_s1 + $0x168] sm:$0xff] }
 0xa9c   :  { %810 = vst.msk [vmem:[#allocation5 + $0x6] sm:$0x1] %vm378_vm3, %v788_v6  ;;  %1004 = vrot.lane.b32.xlu0 %v979_v4, %s3582_s3  ;;  %v1219_v4 = vld [vmem:[%s4683_s1 + $0x110] sm:$0xff] }
 0xa9d   :  { %v999_v55 = vrot.slane %v967_v54, %v3771_v32  ;;  %v3217_v10 = vpack.c.bf16 %v1220_v5, %v1219_v4  ;;  %v1209_v54 = vld [vmem:[%s4683_s1 + $0xc0] sm:$0xff]  ;;  %v1214_v5 = vld [vmem:[%s4683_s1 + $0xe8] sm:$0xff] }
 0xa9e   :  { %1006 = vrot.lane.b32.xlu1 %v983_v13, %s3582_s3  ;;  %v1213_v4 = vld [vmem:[%s4683_s1 + $0xe0] sm:$0xff] }
 0xa9f   :  { %v361_v17 = vpop.permute.xlu1 %360 }
 0xaa0   :  { %382 = vst.msk [vmem:[#allocation5 + $0xc] sm:$0x1] %vm378_vm3, %v361_v17  ;;  %362 = vrot.lane.b32.xlu0 %v341_v12, %s3582_s3 }
 0xaa2   :  { %364 = vrot.lane.b32.xlu1 %v345_v18, %s3582_s3  ;;  %v1203_v18 = vld [vmem:[%s4683_s1 + $0x90] sm:$0xff] }
 0xaa3   :  { %v577_v24 = vpop.permute.xlu1 %576 }
 0xaa4   :  { %597 = vst.msk [vmem:[#allocation5 + $0xd] sm:$0x1] %vm378_vm3, %v577_v24  ;;  %578 = vrot.lane.b32.xlu0 %v557_v22, %s3582_s3  ;;  %v3185_v24 = vpack.c.bf16 %v1204_v19, %v1203_v18  ;;  %v1250_v18 = vld [vmem:[%s4683_s1 + $0x208] sm:$0xff] }
 0xaa6   :  { %580 = vrot.lane.b32.xlu1 %v561_v26, %s3582_s3  ;;  %v3221_v26 = vpack.c.bf16 %v1222_v21, %v1221_v20  ;;  %v1233_v21 = vld [vmem:[%s4683_s1 + $0x180] sm:$0xff] }
 0xaa7   :  { %v792_v31 = vpop.permute.xlu1 %791 }
 0xaa8   :  { %812 = vst.msk [vmem:[#allocation5 + $0xe] sm:$0x1] %vm378_vm3, %v792_v31  ;;  %793 = vrot.lane.b32.xlu0 %v772_v28, %s3582_s3  ;;  %v1206_v31 = vld [vmem:[%s4683_s1 + $0xa8] sm:$0xff] }
 0xaaa   :  { %795 = vrot.lane.b32.xlu1 %v776_v33, %s3582_s3  ;;  %v1223_v33 = vld [vmem:[%s4683_s1 + $0x130] sm:$0xff] }
 0xaab   :  { %v3225_v39 = vpack.c.bf16 %v1224_v34, %v1223_v33  ;;  %v1237_v34 = vld [vmem:[%s4683_s1 + $0x1a0] sm:$0xff] }
 0xaac   :  { %1008 = vrot.lane.b32.xlu0 %v987_v35, %s3582_s3 }
 0xaae   :  { %368 = vrot.lane.b32.xlu1 %v353_v38, %s3582_s3  ;;  %v3189_v38 = vpack.c.bf16 %v1206_v31, %v1205_v16  ;;  %v1254_v16 = vld [vmem:[%s4683_s1 + $0x228] sm:$0xff] }
 0xab0   :  { %366 = vrot.lane.b32.xlu0 %v349_v40, %s3582_s3 }
 0xab2   :  { %584 = vrot.lane.b32.xlu1 %v569_v42, %s3582_s3  ;;  %v1207_v42 = vld [vmem:[%s4683_s1 + $0xb0] sm:$0xff] }
 0xab3   :  { %v3193_v48 = vpack.c.bf16 %v1208_v43, %v1207_v42  ;;  %v1240_v42 = vld [vmem:[%s4683_s1 + $0x1b8] sm:$0xff]  ;;  %v1257_v43 = vld [vmem:[%s4683_s1 + $0x240] sm:$0xff] }
 0xab4   :  { %582 = vrot.lane.b32.xlu0 %v565_v45, %s3582_s3  ;;  %v1226_v45 = vld [vmem:[%s4683_s1 + $0x148] sm:$0xff] }
 0xab6   :  { %799 = vrot.lane.b32.xlu1 %v784_v47, %s3582_s3 }
 0xab8   :  { %797 = vrot.lane.b32.xlu0 %v780_v49, %s3582_s3  ;;  %v3229_v49 = vpack.c.bf16 %v1226_v45, %v1225_v44  ;;  %v1258_v44 = vld [vmem:[%s4683_s1 + $0x248] sm:$0xff] }
 0xaba   :  { %1010 = vrot.lane.b32.xlu1 %v991_v53, %s3582_s3 }
 0xabc   :  { %1012 = vrot.lane.b32.xlu0 %v995_v37, %s3582_s3 }
 0xabe   :  { %1014 = vrot.lane.b32.xlu1 %v999_v55, %s3582_s3  ;;  %v1210_v55 = vld [vmem:[%s4683_s1 + $0xc8] sm:$0xff] }
 0xb0a   :  { %v1001_v29 = vpop.permute.xlu0 %1000 }
 0xb0b   :  { %1024 = vst.msk [vmem:[#allocation5 + $0x3] sm:$0x1] %vm378_vm3, %v1001_v29  ;;  %v1227_v29 = vld [vmem:[%s4683_s1 + $0x150] sm:$0xff] }
 0xb0c   :  { %v1003_v56 = vpop.permute.xlu1 %1002 }
 0xb0d   :  { %1025 = vst.msk [vmem:[#allocation5 + $0x7] sm:$0x1] %vm378_vm3, %v1003_v56  ;;  %v1228_v56 = vld [vmem:[%s4683_s1 + $0x158] sm:$0xff] }
 0xb0e   :  { %v1005_v30 = vpop.permute.xlu0 %1004 }
 0xb0f   :  { %1026 = vst.msk [vmem:[#allocation5 + $0xb] sm:$0x1] %vm378_vm3, %v1005_v30  ;;  %v3197_v30 = vpack.c.bf16 %v1210_v55, %v1209_v54  ;;  %v1260_v54 = vld [vmem:[%s4683_s1 + $0x258] sm:$0xff] }
 0xb10   :  { %v1007_v32 = vpop.permute.xlu1 %1006 }
 0xb11   :  { %1027 = vst.msk [vmem:[#allocation5 + $0xf] sm:$0x1] %vm378_vm3, %v1007_v32  ;;  %v3233_v32 = vpack.c.bf16 %v1228_v56, %v1227_v29  ;;  %v1243_v29 = vld [vmem:[%s4683_s1 + $0x1d0] sm:$0xff]  ;;  %v1244_v56 = vld [vmem:[%s4683_s1 + $0x1d8] sm:$0xff] }
 0xb12   :  { %v363_v61 = vpop.permute.xlu0 %362  ;;  %v1041_v62 = vld [vmem:[#allocation5] sm:$0xf] }
 0xb13   :  { %383 = vst.msk [vmem:[#allocation5 + $0x10] sm:$0x1] %vm378_vm3, %v363_v61  ;;  %2869 = vmatmul.mubr.msk.f32.vlgmr.msra.gmra.mrb[8].mxu0 %vm44_vm1, %v1041_v62  ;;  %v1211_v61 = vld [vmem:[%s4683_s1 + $0xd0] sm:$0xff] }
 0xb14   :  { %v3996_v63 = vld [vmem:[#allocation5 + $0x4] sm:$0xf]  ;;  %3215 = vmatpush3.bf16.xpose.msk.msra.mxu0 %vm3822_vm4, %v3213_v60  ;;  %v365_v0 = vpop.permute.xlu1 %364  ;;  %2938 = vmatprep.mubr.msk.f32.mxu0 %vm3579_vm2, %v3580_v11 }
 0xb15   :  { %v1068_v57 = vcombine.low %v1041_v62, %v3996_v63  ;;  %384 = vst.msk [vmem:[#allocation5 + $0x14] sm:$0x1] %vm378_vm3, %v365_v0  ;;  %3216 = vmatprep.subr.bf16.mxu0 %v3578_v3  ;;  %v1212_v62 = vld [vmem:[%s4683_s1 + $0xd8] sm:$0xff]  ;;  %v1229_v0 = vld [vmem:[%s4683_s1 + $0x160] sm:$0xff] }
 0xb16   :  { %v579_v6 = vpop.permute.xlu0 %578  ;;  %v4019_v13 = vld [vmem:[#allocation5 + $0x8] sm:$0xf]  ;;  %v3237_v2 = vpack.c.bf16 %v1230_v1, %v1229_v0  ;;  %v1246_v0 = vld [vmem:[%s4683_s1 + $0x1e8] sm:$0xff]  ;;  %v1263_v1 = vld [vmem:[%s4683_s1 + $0x270] sm:$0xff] }
 0xb17   :  { %598 = vst.msk [vmem:[#allocation5 + $0x11] sm:$0x1] %vm378_vm3, %v579_v6  ;;  %2830 = vmatprep.mubr.msk.f32.mxu1 %vm44_vm1, %v1068_v57  ;;  %v3201_v57 = vpack.c.bf16 %v1212_v62, %v1211_v61  ;;  %v1231_v6 = vld [vmem:[%s4683_s1 + $0x170] sm:$0xff]  ;;  %v1245_v62 = vld [vmem:[%s4683_s1 + $0x1e0] sm:$0xff] }
 0xb18   :  { %v581_v7 = vpop.permute.xlu1 %580  ;;  %v4021_v8 = vld [vmem:[#allocation5 + $0xc] sm:$0xf] }
 0xb19   :  { %599 = vst.msk [vmem:[#allocation5 + $0x15] sm:$0x1] %vm378_vm3, %v581_v7  ;;  %v1069_v12 = vcombine.low %v4019_v13, %v4021_v8  ;;  %v1232_v7 = vld [vmem:[%s4683_s1 + $0x178] sm:$0xff] }
 0xb1a   :  { %v794_v15 = vpop.permute.xlu0 %793 }
 0xb1b   :  { %813 = vst.msk [vmem:[#allocation5 + $0x12] sm:$0x1] %vm378_vm3, %v794_v15  ;;  %2831 = vmatmul.mubr.msk.f32.vlgmr.msra.gmra.mrb[4].mxu1 %vm44_vm1, %v1069_v12  ;;  %v1215_v12 = vld [vmem:[%s4683_s1 + $0xf0] sm:$0xff]  ;;  %v1216_v15 = vld [vmem:[%s4683_s1 + $0xf8] sm:$0xff] }
 0xb1c   :  { %3183 = vmatpush3.bf16.xpose.msk.msra.mxu1 %vm3822_vm4, %v3181_v9  ;;  %3219 = vmatpush3.bf16.xpose.msk.msra.mxu0 %vm3822_vm4, %v3217_v10  ;;  %v796_v17 = vpop.permute.xlu1 %795  ;;  %v3205_v9 = vpack.c.bf16 %v1214_v5, %v1213_v4  ;;  %v3241_v10 = vpack.c.bf16 %v1232_v7, %v1231_v6  ;;  %v3209_v19 = vpack.c.bf16 %v1216_v15, %v1215_v12  ;;  %v1247_v5 = vld [vmem:[%s4683_s1 + $0x1f0] sm:$0xff]  ;;  %v1248_v6 = vld [vmem:[%s4683_s1 + $0x1f8] sm:$0xff]  ;;  %v1281_v7 = vld [vmem:[%s4683_s1 + $0x300] sm:$0xff] }
 0xb1d   :  { %814 = vst.msk [vmem:[#allocation5 + $0x16] sm:$0x1] %vm378_vm3, %v796_v17  ;;  %3184 = vmatprep.subr.bf16.mxu1 %v3578_v3  ;;  %3220 = vmatprep.subr.bf16.mxu0 %v3578_v3  ;;  %v1249_v17 = vld [vmem:[%s4683_s1 + $0x200] sm:$0xff] }
 0xb1e   :  { %v1009_v22 = vpop.permute.xlu0 %1008  ;;  %v3277_v20 = vpack.c.bf16 %v1250_v18, %v1249_v17  ;;  %v1265_v15 = vld [vmem:[%s4683_s1 + $0x280] sm:$0xff]  ;;  %v1266_v17 = vld [vmem:[%s4683_s1 + $0x288] sm:$0xff]  ;;  %v1284_v18 = vld [vmem:[%s4683_s1 + $0x318] sm:$0xff] }
 0xb1f   :  { %1028 = vst.msk [vmem:[#allocation5 + $0x13] sm:$0x1] %vm378_vm3, %v1009_v22  ;;  %v1234_v22 = vld [vmem:[%s4683_s1 + $0x188] sm:$0xff] }
 0xb20   :  { %v369_v23 = vpop.permute.xlu1 %368 }
 0xb21   :  { %386 = vst.msk [vmem:[#allocation5 + $0x1c] sm:$0x1] %vm378_vm3, %v369_v23  ;;  %v1252_v23 = vld [vmem:[%s4683_s1 + $0x218] sm:$0xff] }
 0xb22   :  { %v367_v27 = vpop.permute.xlu0 %366 }
 0xb23   :  { %385 = vst.msk [vmem:[#allocation5 + $0x18] sm:$0x1] %vm378_vm3, %v367_v27  ;;  %v1235_v27 = vld [vmem:[%s4683_s1 + $0x190] sm:$0xff] }
 0xb24   :  { %3187 = vmatpush3.bf16.xpose.msk.msra.mxu1 %vm3822_vm4, %v3185_v24  ;;  %3223 = vmatpush3.bf16.xpose.msk.msra.mxu0 %vm3822_vm4, %v3221_v26  ;;  %v585_v28 = vpop.permute.xlu1 %584  ;;  %v3245_v24 = vpack.c.bf16 %v1234_v22, %v1233_v21  ;;  %v1267_v21 = vld [vmem:[%s4683_s1 + $0x290] sm:$0xff]  ;;  %v1268_v22 = vld [vmem:[%s4683_s1 + $0x298] sm:$0xff] }
 0xb25   :  { %601 = vst.msk [vmem:[#allocation5 + $0x1d] sm:$0x1] %vm378_vm3, %v585_v28  ;;  %3188 = vmatprep.subr.bf16.mxu1 %v3578_v3  ;;  %3224 = vmatprep.subr.bf16.mxu0 %v3578_v3  ;;  %v1236_v28 = vld [vmem:[%s4683_s1 + $0x198] sm:$0xff] }
 0xb26   :  { %v583_v35 = vpop.permute.xlu0 %582  ;;  %v4097_v50 = vld [vmem:[#allocation5 + $0x10] sm:$0xf]  ;;  %v3249_v31 = vpack.c.bf16 %v1236_v28, %v1235_v27  ;;  %v1270_v27 = vld [vmem:[%s4683_s1 + $0x2a8] sm:$0xff]  ;;  %v1287_v28 = vld [vmem:[%s4683_s1 + $0x330] sm:$0xff] }
 0xb27   :  { %600 = vst.msk [vmem:[#allocation5 + $0x19] sm:$0x1] %vm378_vm3, %v583_v35  ;;  %v1238_v35 = vld [vmem:[%s4683_s1 + $0x1a8] sm:$0xff] }
 0xb28   :  { %v800_v36 = vpop.permute.xlu1 %799 }
 0xb29   :  { %816 = vst.msk [vmem:[#allocation5 + $0x1e] sm:$0x1] %vm378_vm3, %v800_v36  ;;  %v1255_v36 = vld [vmem:[%s4683_s1 + $0x230] sm:$0xff] }
 0xb2a   :  { %v798_v40 = vpop.permute.xlu0 %797 }
 0xb2b   :  { %815 = vst.msk [vmem:[#allocation5 + $0x1a] sm:$0x1] %vm378_vm3, %v798_v40 }
 0xb2c   :  { %3191 = vmatpush3.bf16.xpose.msk.msra.mxu1 %vm3822_vm4, %v3189_v38  ;;  %3227 = vmatpush3.bf16.xpose.msk.msra.mxu0 %vm3822_vm4, %v3225_v39  ;;  %v1011_v41 = vpop.permute.xlu1 %1010  ;;  %v1256_v38 = vld [vmem:[%s4683_s1 + $0x238] sm:$0xff]  ;;  %v3253_v39 = vpack.c.bf16 %v1238_v35, %v1237_v34  ;;  %v1289_v35 = vld [vmem:[%s4683_s1 + $0x340] sm:$0xff] }
 0xb2d   :  { %1029 = vst.msk [vmem:[#allocation5 + $0x17] sm:$0x1] %vm378_vm3, %v1011_v41  ;;  %3192 = vmatprep.subr.bf16.mxu1 %v3578_v3  ;;  %3228 = vmatprep.subr.bf16.mxu0 %v3578_v3  ;;  %v3289_v40 = vpack.c.bf16 %v1256_v38, %v1255_v36  ;;  %v1239_v41 = vld [vmem:[%s4683_s1 + $0x1b0] sm:$0xff]  ;;  %v1272_v34 = vld [vmem:[%s4683_s1 + $0x2b8] sm:$0xff]  ;;  %v1290_v36 = vld [vmem:[%s4683_s1 + $0x348] sm:$0xff] }
 0xb2e   :  { %v1013_v46 = vpop.permute.xlu0 %1012  ;;  %v3257_v45 = vpack.c.bf16 %v1240_v42, %v1239_v41  ;;  %v1274_v41 = vld [vmem:[%s4683_s1 + $0x2c8] sm:$0xff]  ;;  %v1291_v42 = vld [vmem:[%s4683_s1 + $0x350] sm:$0xff] }
 0xb2f   :  { %1030 = vst.msk [vmem:[#allocation5 + $0x1b] sm:$0x1] %vm378_vm3, %v1013_v46  ;;  %v3293_v46 = vpack.c.bf16 %v1258_v44, %v1257_v43  ;;  %v1292_v43 = vld [vmem:[%s4683_s1 + $0x358] sm:$0xff] }
 0xb30   :  { %v1015_v47 = vpop.permute.xlu1 %1014 }
 0xb31   :  { %1031 = vst.msk [vmem:[#allocation5 + $0x1f] sm:$0x1] %vm378_vm3, %v1015_v47  ;;  %v1241_v47 = vld [vmem:[%s4683_s1 + $0x1c0] sm:$0xff] }
 0xb34   :  { %3195 = vmatpush3.bf16.xpose.msk.msra.mxu1 %vm3822_vm4, %v3193_v48  ;;  %3231 = vmatpush3.bf16.xpose.msk.msra.mxu0 %vm3822_vm4, %v3229_v49  ;;  %v4099_v53 = vld [vmem:[#allocation5 + $0x14] sm:$0xf]  ;;  %v1242_v48 = vld [vmem:[%s4683_s1 + $0x1c8] sm:$0xff]  ;;  %v1259_v49 = vld [vmem:[%s4683_s1 + $0x250] sm:$0xff] }
 0xb35   :  { %v1070_v37 = vcombine.low %v4097_v50, %v4099_v53  ;;  %3196 = vmatprep.subr.bf16.mxu1 %v3578_v3  ;;  %3232 = vmatprep.subr.bf16.mxu0 %v3578_v3  ;;  %v3297_v55 = vpack.c.bf16 %v1260_v54, %v1259_v49  ;;  %v1294_v49 = vld [vmem:[%s4683_s1 + $0x368] sm:$0xff] }
 0xb36   :  { %v4118_v58 = vld [vmem:[#allocation5 + $0x18] sm:$0xf] }
 0xb37   :  { %2833 = vmatprep.mubr.msk.f32.mxu1 %vm44_vm1, %v1070_v37  ;;  %v3261_v37 = vpack.c.bf16 %v1242_v48, %v1241_v47  ;;  %v1276_v47 = vld [vmem:[%s4683_s1 + $0x2d8] sm:$0xff]  ;;  %v1293_v48 = vld [vmem:[%s4683_s1 + $0x360] sm:$0xff] }
 0xb38   :  { %v4120_v59 = vld [vmem:[#allocation5 + $0x1c] sm:$0xf] }
 0xb39   :  { %v1071_v60 = vcombine.low %v4118_v58, %v4120_v59 }
 0xb3b   :  { %2834 = vmatmul.mubr.msk.f32.gmra.mrb[6].mxu1 %vm44_vm1, %v1071_v60  ;;  %v3265_v60 = vpack.c.bf16 %v1244_v56, %v1243_v29  ;;  %v1278_v29 = vld [vmem:[%s4683_s1 + $0x2e8] sm:$0xff]  ;;  %v1295_v56 = vld [vmem:[%s4683_s1 + $0x370] sm:$0xff] }
 0xb3c   :  { %3199 = vmatpush3.bf16.xpose.msk.msra.mxu1 %vm3822_vm4, %v3197_v30  ;;  %3235 = vmatpush3.bf16.xpose.msk.msra.mxu0 %vm3822_vm4, %v3233_v32  ;;  %v1261_v30 = vld [vmem:[%s4683_s1 + $0x260] sm:$0xff]  ;;  %v1262_v32 = vld [vmem:[%s4683_s1 + $0x268] sm:$0xff] }
 0xb3d   :  { %3200 = vmatprep.subr.bf16.mxu1 %v3578_v3  ;;  %3236 = vmatprep.subr.bf16.mxu0 %v3578_v3  ;;  %v3301_v61 = vpack.c.bf16 %v1262_v32, %v1261_v30  ;;  %v1296_v30 = vld [vmem:[%s4683_s1 + $0x378] sm:$0xff] }
 0xb3e   :  { %2903 = vmatprep.mubr.msk.f32.mxu1 %vm3579_vm2, %v3580_v11 }
 0xb44   :  { %3203 = vmatpush3.bf16.xpose.msk.msra.mxu1 %vm3822_vm4, %v3201_v57  ;;  %3239 = vmatpush3.bf16.xpose.msk.msra.mxu0 %vm3822_vm4, %v3237_v2  ;;  %v1264_v57 = vld [vmem:[%s4683_s1 + $0x278] sm:$0xff]  ;;  %v3269_v2 = vpack.c.bf16 %v1246_v0, %v1245_v62 }
 0xb45   :  { %3204 = vmatprep.subr.bf16.mxu1 %v3578_v3  ;;  %3240 = vmatprep.subr.bf16.mxu0 %v3578_v3  ;;  %v3305_v4 = vpack.c.bf16 %v1264_v57, %v1263_v1  ;;  %v1280_v62 = vld [vmem:[%s4683_s1 + $0x2f8] sm:$0xff]  ;;  %v1297_v1 = vld [vmem:[%s4683_s1 + $0x380] sm:$0xff]  ;;  %v1298_v57 = vld [vmem:[%s4683_s1 + $0x388] sm:$0xff] }
 0xb4c   :  { %3207 = vmatpush3.bf16.xpose.msk.msra.mxu1 %vm3822_vm4, %v3205_v9  ;;  %3243 = vmatpush3.bf16.xpose.msk.msra.mxu0 %vm3822_vm4, %v3241_v10  ;;  %v1282_v9 = vld [vmem:[%s4683_s1 + $0x308] sm:$0xff]  ;;  %v3273_v10 = vpack.c.bf16 %v1248_v6, %v1247_v5  ;;  %v4503_v6 = vand.u32 127, %v277_v25 }
 0xb4d   :  { %3208 = vmatprep.subr.bf16.mxu1 %v3578_v3  ;;  %3276 = vmatprep.subr.bf16.mxu0 %v3578_v3  ;;  %v3341_v12 = vpack.c.bf16 %v1282_v9, %v1281_v7 }
 0xb4e   :  { %vm2275_vm5 = vcmp.lt.s32.totalorder %v4503_v6, 8 }
 0xb53   :  { %2939 = vmatmul.mubr.msk.f32.vlgmr.msra.gmra.mrb[10].mxu0 %vm44_vm1, %v4019_v13  ;;  %v1251_v13 = vld [vmem:[%s4683_s1 + $0x210] sm:$0xff] }
 0xb54   :  { %3211 = vmatpush3.bf16.xpose.msk.msra.mxu1 %vm3822_vm4, %v3209_v19  ;;  %3279 = vmatpush3.bf16.xpose.msk.msra.mxu0 %vm3822_vm4, %v3277_v20  ;;  %v3281_v26 = vpack.c.bf16 %v1252_v23, %v1251_v13  ;;  %v3309_v19 = vpack.c.bf16 %v1266_v17, %v1265_v15  ;;  %v1286_v13 = vld [vmem:[%s4683_s1 + $0x328] sm:$0xff]  ;;  %v3313_v23 = vpack.c.bf16 %v1268_v22, %v1267_v21  ;;  %v2460_v15 = vld [vmem:[%s4690_s8] ss:$0 sm:$0xff]  ;;  %v1303_v17 = vld [vmem:[%s4683_s1 + $0x3b0] sm:$0xff] }
 0xb55   :  { %3244 = vmatprep.subr.bf16.mxu1 %v3578_v3  ;;  %3280 = vmatprep.subr.bf16.mxu0 %v3578_v3 }
 0xb56   :  { %3008 = vmatprep.mubr.msk.f32.mxu0 %vm3579_vm2, %v3580_v11 }
 0xb5b   :  { %2904 = vmatmul.mubr.msk.f32.vlgmr.msra.gmra.mrb[8].mxu1 %vm44_vm1, %v3996_v63  ;;  %v1253_v63 = vld [vmem:[%s4683_s1 + $0x220] sm:$0xff] }
 0xb5c   :  { %3247 = vmatpush3.bf16.xpose.msk.msra.mxu1 %vm3822_vm4, %v3245_v24  ;;  %3283 = vmatpush3.bf16.xpose.msk.msra.mxu0 %vm3822_vm4, %v3281_v26  ;;  %v3285_v33 = vpack.c.bf16 %v1254_v16, %v1253_v63  ;;  %v1269_v26 = vld [vmem:[%s4683_s1 + $0x2a0] sm:$0xff]  ;;  %v1288_v63 = vld [vmem:[%s4683_s1 + $0x338] sm:$0xff] }
 0xb5d   :  { %3248 = vmatprep.subr.bf16.mxu1 %v3578_v3  ;;  %3284 = vmatprep.subr.bf16.mxu0 %v3578_v3  ;;  %v3317_v16 = vpack.c.bf16 %v1270_v27, %v1269_v26  ;;  %v1307_v27 = vld [vmem:[%s4683_s1 + $0x3d0] sm:$0xff] }
 0xb5e   :  { %2973 = vmatprep.mubr.msk.f32.mxu1 %vm3579_vm2, %v3580_v11 }
 0xb64   :  { %3251 = vmatpush3.bf16.xpose.msk.msra.mxu1 %vm3822_vm4, %v3249_v31  ;;  %3287 = vmatpush3.bf16.xpose.msk.msra.mxu0 %vm3822_vm4, %v3285_v33  ;;  %v3353_v31 = vpack.c.bf16 %v1288_v63, %v1287_v28  ;;  %v1271_v33 = vld [vmem:[%s4683_s1 + $0x2b0] sm:$0xff]  ;;  %v1308_v28 = vld [vmem:[%s4683_s1 + $0x3d8] sm:$0xff] }
 0xb65   :  { %3252 = vmatprep.subr.bf16.mxu1 %v3578_v3  ;;  %3288 = vmatprep.subr.bf16.mxu0 %v3578_v3  ;;  %v3321_v38 = vpack.c.bf16 %v1272_v34, %v1271_v33  ;;  %v3393_v63 = vpack.c.bf16 %v1308_v28, %v1307_v27  ;;  %v1311_v34 = vld [vmem:[%s4683_s1 + $0x3f0] sm:$0xff] }
 0xb6c   :  { %3255 = vmatpush3.bf16.xpose.msk.msra.mxu1 %vm3822_vm4, %v3253_v39  ;;  %3291 = vmatpush3.bf16.xpose.msk.msra.mxu0 %vm3822_vm4, %v3289_v40  ;;  %v3357_v39 = vpack.c.bf16 %v1290_v36, %v1289_v35  ;;  %v1273_v40 = vld [vmem:[%s4683_s1 + $0x2c0] sm:$0xff]  ;;  %v1312_v35 = vld [vmem:[%s4683_s1 + $0x3f8] sm:$0xff] }
 0xb6d   :  { %3256 = vmatprep.subr.bf16.mxu1 %v3578_v3  ;;  %3292 = vmatprep.subr.bf16.mxu0 %v3578_v3  ;;  %v3325_v44 = vpack.c.bf16 %v1274_v41, %v1273_v40  ;;  %v3401_v41 = vpack.c.bf16 %v1312_v35, %v1311_v34 }
 0xb74   :  { %3259 = vmatpush3.bf16.xpose.msk.msra.mxu1 %vm3822_vm4, %v3257_v45  ;;  %3295 = vmatpush3.bf16.xpose.msk.msra.mxu0 %vm3822_vm4, %v3293_v46  ;;  %v3361_v45 = vpack.c.bf16 %v1292_v43, %v1291_v42  ;;  %v1275_v46 = vld [vmem:[%s4683_s1 + $0x2d0] sm:$0xff] }
 0xb75   :  { %3260 = vmatprep.subr.bf16.mxu1 %v3578_v3  ;;  %3296 = vmatprep.subr.bf16.mxu0 %v3578_v3  ;;  %v3329_v54 = vpack.c.bf16 %v1276_v47, %v1275_v46 }
 0xb7c   :  { %3263 = vmatpush3.bf16.xpose.msk.msra.mxu1 %vm3822_vm4, %v3261_v37  ;;  %3299 = vmatpush3.bf16.xpose.msk.msra.mxu0 %vm3822_vm4, %v3297_v55  ;;  %v3365_v37 = vpack.c.bf16 %v1294_v49, %v1293_v48  ;;  %v1277_v55 = vld [vmem:[%s4683_s1 + $0x2e0] sm:$0xff] }
 0xb7d   :  { %3264 = vmatprep.subr.bf16.mxu1 %v3578_v3  ;;  %3300 = vmatprep.subr.bf16.mxu0 %v3578_v3  ;;  %v3333_v32 = vpack.c.bf16 %v1278_v29, %v1277_v55 }
 0xb84   :  { %3267 = vmatpush3.bf16.xpose.msk.msra.mxu1 %vm3822_vm4, %v3265_v60  ;;  %3303 = vmatpush3.bf16.xpose.msk.msra.mxu0 %vm3822_vm4, %v3301_v61  ;;  %v3369_v60 = vpack.c.bf16 %v1296_v30, %v1295_v56  ;;  %v1279_v61 = vld [vmem:[%s4683_s1 + $0x2f0] sm:$0xff] }
 0xb85   :  { %3268 = vmatprep.subr.bf16.mxu1 %v3578_v3  ;;  %3304 = vmatprep.subr.bf16.mxu0 %v3578_v3  ;;  %v3337_v0 = vpack.c.bf16 %v1280_v62, %v1279_v61 }
 0xb8c   :  { %3271 = vmatpush3.bf16.xpose.msk.msra.mxu1 %vm3822_vm4, %v3269_v2  ;;  %3307 = vmatpush3.bf16.xpose.msk.msra.mxu0 %vm3822_vm4, %v3305_v4  ;;  %v3373_v2 = vpack.c.bf16 %v1298_v57, %v1297_v1  ;;  %v1300_v4 = vld [vmem:[%s4683_s1 + $0x398] sm:$0xff] }
 0xb8d   :  { %3272 = vmatprep.subr.bf16.mxu1 %v3578_v3  ;;  %3340 = vmatprep.subr.bf16.mxu0 %v3578_v3 }
 0xb93   :  { %3009 = vmatmul.mubr.msk.f32.vlgmr.msra.gmra.mrb[12].mxu0 %vm44_vm1, %v4097_v50  ;;  %v1283_v50 = vld [vmem:[%s4683_s1 + $0x310] sm:$0xff] }
 0xb94   :  { %3275 = vmatpush3.bf16.xpose.msk.msra.mxu1 %vm3822_vm4, %v3273_v10  ;;  %3343 = vmatpush3.bf16.xpose.msk.msra.mxu0 %vm3822_vm4, %v3341_v12  ;;  %v3345_v20 = vpack.c.bf16 %v1284_v18, %v1283_v50  ;;  %v1304_v50 = vld [vmem:[%s4683_s1 + $0x3b8] sm:$0xff] }
 0xb95   :  { %3308 = vmatprep.subr.bf16.mxu1 %v3578_v3  ;;  %3344 = vmatprep.subr.bf16.mxu0 %v3578_v3  ;;  %v3385_v22 = vpack.c.bf16 %v1304_v50, %v1303_v17 }
 0xb96   :  { %3078 = vmatprep.mubr.msk.f32.mxu0 %vm3579_vm2, %v3580_v11 }
 0xb9b   :  { %2974 = vmatmul.mubr.msk.f32.vlgmr.msra.gmra.mrb[10].mxu1 %vm44_vm1, %v4021_v8  ;;  %v1285_v8 = vld [vmem:[%s4683_s1 + $0x320] sm:$0xff] }
 0xb9c   :  { %3311 = vmatpush3.bf16.xpose.msk.msra.mxu1 %vm3822_vm4, %v3309_v19  ;;  %3347 = vmatpush3.bf16.xpose.msk.msra.mxu0 %vm3822_vm4, %v3345_v20  ;;  %v3349_v24 = vpack.c.bf16 %v1286_v13, %v1285_v8 }
 0xb9d   :  { %3312 = vmatprep.subr.bf16.mxu1 %v3578_v3  ;;  %3348 = vmatprep.subr.bf16.mxu0 %v3578_v3 }
 0xb9e   :  { %3043 = vmatprep.mubr.msk.f32.mxu1 %vm3579_vm2, %v3580_v11 }
 0xba4   :  { %3315 = vmatpush3.bf16.xpose.msk.msra.mxu1 %vm3822_vm4, %v3313_v23  ;;  %3351 = vmatpush3.bf16.xpose.msk.msra.mxu0 %vm3822_vm4, %v3349_v24  ;;  %v1305_v23 = vld [vmem:[%s4683_s1 + $0x3c0] sm:$0xff]  ;;  %v1306_v24 = vld [vmem:[%s4683_s1 + $0x3c8] sm:$0xff] }
 0xba5   :  { %3316 = vmatprep.subr.bf16.mxu1 %v3578_v3  ;;  %3352 = vmatprep.subr.bf16.mxu0 %v3578_v3  ;;  %v3389_v26 = vpack.c.bf16 %v1306_v24, %v1305_v23 }
 0xbac   :  { %3319 = vmatpush3.bf16.xpose.msk.msra.mxu1 %vm3822_vm4, %v3317_v16  ;;  %3355 = vmatpush3.bf16.xpose.msk.msra.mxu0 %vm3822_vm4, %v3353_v31  ;;  %v1309_v16 = vld [vmem:[%s4683_s1 + $0x3e0] sm:$0xff]  ;;  %v1310_v31 = vld [vmem:[%s4683_s1 + $0x3e8] sm:$0xff] }
 0xbad   :  { %3320 = vmatprep.subr.bf16.mxu1 %v3578_v3  ;;  %3356 = vmatprep.subr.bf16.mxu0 %v3578_v3  ;;  %v3397_v33 = vpack.c.bf16 %v1310_v31, %v1309_v16 }
 0xbb4   :  { %3323 = vmatpush3.bf16.xpose.msk.msra.mxu1 %vm3822_vm4, %v3321_v38  ;;  %3359 = vmatpush3.bf16.xpose.msk.msra.mxu0 %vm3822_vm4, %v3357_v39 }
 0xbb5   :  { %3324 = vmatprep.subr.bf16.mxu1 %v3578_v3  ;;  %3360 = vmatprep.subr.bf16.mxu0 %v3578_v3 }
 0xbbc   :  { %3327 = vmatpush3.bf16.xpose.msk.msra.mxu1 %vm3822_vm4, %v3325_v44  ;;  %3363 = vmatpush3.bf16.xpose.msk.msra.mxu0 %vm3822_vm4, %v3361_v45 }
 0xbbd   :  { %3328 = vmatprep.subr.bf16.mxu1 %v3578_v3  ;;  %3364 = vmatprep.subr.bf16.mxu0 %v3578_v3 }
 0xbc4   :  { %3331 = vmatpush3.bf16.xpose.msk.msra.mxu1 %vm3822_vm4, %v3329_v54  ;;  %3367 = vmatpush3.bf16.xpose.msk.msra.mxu0 %vm3822_vm4, %v3365_v37 }
 0xbc5   :  { %3332 = vmatprep.subr.bf16.mxu1 %v3578_v3  ;;  %3368 = vmatprep.subr.bf16.mxu0 %v3578_v3 }
 0xbcc   :  { %3335 = vmatpush3.bf16.xpose.msk.msra.mxu1 %vm3822_vm4, %v3333_v32  ;;  %3371 = vmatpush3.bf16.xpose.msk.msra.mxu0 %vm3822_vm4, %v3369_v60 }
 0xbcd   :  { %3336 = vmatprep.subr.bf16.mxu1 %v3578_v3 }
 0xbd3   :  { %3079 = vmatmul.mubr.msk.f32.vlgmr.msra.gmra.mrb[14].mxu0 %vm44_vm1, %v4118_v58  ;;  %v1299_v58 = vld [vmem:[%s4683_s1 + $0x390] sm:$0xff] }
 0xbd4   :  { %3339 = vmatpush3.bf16.xpose.msk.msra.mxu1 %vm3822_vm4, %v3337_v0  ;;  %v3377_v5 = vpack.c.bf16 %v1300_v4, %v1299_v58 }
 0xbd5   :  { %3372 = vmatprep.subr.bf16.mxu1 %v3578_v3 }
 0xbdb   :  { %3044 = vmatmul.mubr.msk.f32.vlgmr.msra.gmra.mrb[12].mxu1 %vm44_vm1, %v4099_v53  ;;  %v1302_v53 = vld [vmem:[%s4683_s1 + $0x3a8] sm:$0xff] }
 0xbdc   :  { %3375 = vmatpush3.bf16.xpose.msk.msra.mxu1 %vm3822_vm4, %v3373_v2  ;;  %3113 = vmatprep.mubr.msk.f32.mxu1 %vm3579_vm2, %v3580_v11  ;;  %v1301_v11 = vld [vmem:[%s4683_s1 + $0x3a0] sm:$0xff]  ;;  %s3584_s1 = smov 96  }
 0xbdd   :  { %3376 = vmatprep.subr.bf16.mxu1 %v3578_v3  ;;  %v3381_v12 = vpack.c.bf16 %v1302_v53, %v1301_v11 }
 0xbe4   :  { %3379 = vmatpush3.bf16.xpose.msk.msra.mxu1 %vm3822_vm4, %v3377_v5 }
 0xbe5   :  { %3380 = vmatprep.subr.bf16.mxu1 %v3578_v3 }
 0xbe6   :  { %v1429_v7 = vpop.f32.mrb[8].mxu0 }
 0xbe7   :  { %v4517_v25 = vsel %vm2275_vm5, %v1429_v7, -1e+30  ;;  %v2870_v9 = vpop.f32.mrb[9].mxu0 }
 0xbe8   :  { %v2285_v10 = vsel %vm2284_vm6, %v4517_v25, -inf }
 0xbe9   :  { %2286 = vmax.xlane.f32.xlu0 %v2285_v10 }
 0xbec   :  { %3383 = vmatpush3.bf16.xpose.msk.msra.mxu1 %vm3822_vm4, %v3381_v12 }
 0xbed   :  { %3384 = vmatprep.subr.bf16.mxu1 %v3578_v3 }
 0xbee   :  { %v2832_v18 = vpop.f32.mrb[4].mxu1 }
 0xbef   :  { %v1152_v19 = vadd.f32 %v2832_v18, %v2460_v15  ;;  %v1146_v20 = vpop.f32.mrb[5].mxu1 }
 0xbf0   :  { %v1147_v21 = vadd.f32 %v2460_v15, %v1146_v20 }
 0xbf1   :  { %v1170_v8 = vcombine.high %v1152_v19, %v1152_v19  ;;  %1179 = vst [vmem:[#allocation6 + $0x8] sm:$0xf] %v1152_v19 }
 0xbf2   :  { %v1169_v13 = vcombine.high %v1147_v21, %v1147_v21  ;;  %1177 = vst [vmem:[#allocation6] sm:$0xf] %v1147_v21 }
 0xbf3   :  { %1180 = vst [vmem:[#allocation6 + $0xc] sm:$0xf] %v1170_v8 }
 0xbf4   :  { %1178 = vst [vmem:[#allocation6 + $0x4] sm:$0xf] %v1169_v13  ;;  %3387 = vmatpush3.bf16.xpose.msk.msra.mxu1 %vm3822_vm4, %v3385_v22 }
 0xbf5   :  { %3388 = vmatprep.subr.bf16.mxu1 %v3578_v3 }
 0xbfc   :  { %3391 = vmatpush3.bf16.xpose.msk.msra.mxu1 %vm3822_vm4, %v3389_v26 }
 0xbfd   :  { %3392 = vmatprep.subr.bf16.mxu1 %v3578_v3 }
 0xc04   :  { %3395 = vmatpush3.bf16.xpose.msk.msra.mxu1 %vm3822_vm4, %v3393_v63 }
 0xc05   :  { %3396 = vmatprep.subr.bf16.mxu1 %v3578_v3 }
 0xc0c   :  { %3399 = vmatpush3.bf16.xpose.msk.msra.mxu1 %vm3822_vm4, %v3397_v33 }
 0xc0d   :  { %3400 = vmatprep.subr.bf16.mxu1 %v3578_v3 }
 0xc0e   :  { %v2835_v36 = vpop.f32.mrb[6].mxu1 }
 0xc0f   :  { %v1162_v38 = vadd.f32 %v2835_v36, %v2460_v15  ;;  %v1156_v39 = vpop.f32.mrb[7].mxu1 }
 0xc10   :  { %v1157_v40 = vadd.f32 %v2460_v15, %v1156_v39 }
 0xc11   :  { %v1172_v42 = vcombine.high %v1162_v38, %v1162_v38  ;;  %1183 = vst [vmem:[#allocation6 + $0x18] sm:$0xf] %v1162_v38 }
 0xc12   :  { %v1171_v43 = vcombine.high %v1157_v40, %v1157_v40  ;;  %1181 = vst [vmem:[#allocation6 + $0x10] sm:$0xf] %v1157_v40 }
 0xc13   :  { %1184 = vst [vmem:[#allocation6 + $0x1c] sm:$0xf] %v1172_v42 }
 0xc14   :  { %1182 = vst [vmem:[#allocation6 + $0x14] sm:$0xf] %v1171_v43  ;;  %3403 = vmatpush3.bf16.xpose.msk.msra.mxu1 %vm3822_vm4, %v3401_v41 }
 0xc1b   :  { %3114 = vmatmul.mubr.msk.f32.vlgmr.msra.gmra.mrb[14].mxu1 %vm44_vm1, %v4120_v59 }
 0xc26   :  { %v1669_v3 = vpop.f32.mrb[10].mxu0 }
 0xc27   :  { %v2278_v44 = vsel %vm2275_vm5, %v1669_v3, -1e+30  ;;  %v2940_v45 = vpop.f32.mrb[11].mxu0 }
 0xc28   :  { %v2291_v46 = vsel %vm2284_vm6, %v2278_v44, -inf }
 0xc29   :  { %2292 = vmax.xlane.f32.xlu0 %v2291_v46 }
 0xc2e   :  { %v1549_v47 = vpop.f32.mrb[8].mxu1 }
 0xc2f   :  { %v2277_v48 = vsel %vm2275_vm5, %v1549_v47, -1e+30  ;;  %v2905_v49 = vpop.f32.mrb[9].mxu1 }
 0xc30   :  { %v2288_v54 = vsel %vm2284_vm6, %v2277_v48, -inf }
 0xc31   :  { %2289 = vmax.xlane.f32.xlu1 %v2288_v54 }
 0xc66   :  { %v1909_v14 = vpop.f32.mrb[12].mxu0 }
 0xc67   :  { %v2280_v59 = vsel %vm2275_vm5, %v1909_v14, -1e+30  ;;  %v3010_v37 = vpop.f32.mrb[13].mxu0 }
 0xc68   :  { %v2297_v55 = vsel %vm2284_vm6, %v2280_v59, -inf }
 0xc69   :  { %2298 = vmax.xlane.f32.xlu1 %v2297_v55 }
 0xc6e   :  { %v1789_v29 = vpop.f32.mrb[10].mxu1 }
 0xc6f   :  { %v2279_v56 = vsel %vm2275_vm5, %v1789_v29, -1e+30  ;;  %v2975_v30 = vpop.f32.mrb[11].mxu1 }
 0xc70   :  { %v2294_v32 = vsel %vm2284_vm6, %v2279_v56, -inf }
 0xc71   :  { %2295 = vmax.xlane.f32.xlu0 %v2294_v32 }
 0xc76   :  { %v2287_v60 = vpop.xlane.xlu0 %2286 }
 0xc77   :  { %v2309_v61 = vsub.f32 %v4517_v25, %v2287_v60 }
 0xc79   :  { %v2317_v62 = vmul.f32 1.442695, %v2309_v61 }
 0xc7b   :  { %3452 = vpow2.f32 %v2317_v62 }
 0xc85   :  { %v3453_v58 = vpop.eup %3452 }
 0xc86   :  { %v2333_v4 = vsel %vm2284_vm6, %v3453_v58, 0.0 }
 0xca6   :  { %v2149_v0 = vpop.f32.mrb[14].mxu0 }
 0xca7   :  { %v2282_v1 = vsel %vm2275_vm5, %v2149_v0, -1e+30  ;;  %v3080_v57 = vpop.f32.mrb[15].mxu0 }
 0xca8   :  { %v2303_v2 = vsel %vm2284_vm6, %v2282_v1, -inf }
 0xca9   :  { %2304 = vmax.xlane.f32.xlu1 %v2303_v2 }
 0xcad   :  { %2334 = vadd.xlane.f32.xlu1 %v2333_v4 }
 0xcae   :  { %v2029_v5 = vpop.f32.mrb[12].mxu1 }
 0xcaf   :  { %v2281_v11 = vsel %vm2275_vm5, %v2029_v5, -1e+30  ;;  %v3045_v53 = vpop.f32.mrb[13].mxu1 }
 0xcb0   :  { %v2300_v7 = vsel %vm2284_vm6, %v2281_v11, -inf }
 0xcb1   :  { %2301 = vmax.xlane.f32.xlu0 %v2300_v7 }
 0xcb6   :  { %v2293_v25 = vpop.xlane.xlu0 %2292 }
 0xcb7   :  { %v2311_v9 = vsub.f32 %v2278_v44, %v2293_v25 }
 0xcb9   :  { %v2321_v10 = vmul.f32 1.442695, %v2311_v9 }
 0xcbb   :  { %3454 = vpow2.f32 %v2321_v10 }
 0xcbe   :  { %v2290_v17 = vpop.xlane.xlu1 %2289 }
 0xcbf   :  { %v2310_v50 = vsub.f32 %v2277_v48, %v2290_v17 }
 0xcc1   :  { %v2319_v18 = vmul.f32 1.442695, %v2310_v50 }
 0xcc3   :  { %3456 = vpow2.f32 %v2319_v18 }
 0xcc5   :  { %v3455_v12 = vpop.eup %3454 }
 0xcc6   :  { %v2339_v15 = vsel %vm2284_vm6, %v3455_v12, 0.0 }
 0xcc7   :  { %2340 = vadd.xlane.f32.xlu1 %v2339_v15 }
 0xccd   :  { %v3457_v8 = vpop.eup %3456 }
 0xcce   :  { %v2336_v13 = vsel %vm2284_vm6, %v3457_v8, 0.0 }
 0xcee   :  { %v2269_v19 = vpop.f32.mrb[14].mxu1 }
 0xcef   :  { %v2283_v20 = vsel %vm2275_vm5, %v2269_v19, -1e+30  ;;  %v3115_v21 = vpop.f32.mrb[15].mxu1 }
 0xcf0   :  { %v2306_v22 = vsel %vm2284_vm6, %v2283_v20, -inf }
 0xcf1   :  { %2307 = vmax.xlane.f32.xlu0 %v2306_v22 }
 0xcf5   :  { %2337 = vadd.xlane.f32.xlu0 %v2336_v13 }
 0xcf6   :  { %v2299_v23 = vpop.xlane.xlu1 %2298 }
 0xcf7   :  { %v2313_v24 = vsub.f32 %v2280_v59, %v2299_v23 }
 0xcf9   :  { %v2325_v26 = vmul.f32 1.442695, %v2313_v24 }
 0xcfb   :  { %3458 = vpow2.f32 %v2325_v26 }
 0xcfe   :  { %v2296_v27 = vpop.xlane.xlu0 %2295 }
 0xcff   :  { %v2312_v28 = vsub.f32 %v2279_v56, %v2296_v27 }
 0xd01   :  { %v2323_v63 = vmul.f32 1.442695, %v2312_v28 }
 0xd03   :  { %3460 = vpow2.f32 %v2323_v63 }
 0xd05   :  { %v3459_v16 = vpop.eup %3458 }
 0xd06   :  { %v2345_v6 = vsel %vm2284_vm6, %v3459_v16, 0.0 }
 0xd07   :  { %2346 = vadd.xlane.f32.xlu1 %v2345_v6 }
 0xd0d   :  { %v3461_v31 = vpop.eup %3460 }
 0xd0e   :  { %v2342_v33 = vsel %vm2284_vm6, %v3461_v31, 0.0 }
 0xd0f   :  { %2343 = vadd.xlane.f32.xlu0 %v2342_v33 }
 0xd36   :  { %v2305_v34 = vpop.xlane.xlu1 %2304 }
 0xd37   :  { %v2315_v35 = vsub.f32 %v2282_v1, %v2305_v34 }
 0xd39   :  { %v2329_v36 = vmul.f32 1.442695, %v2315_v35 }
 0xd3a   :  { %v2335_v38 = vpop.xlane.xlu1 %2334 }
 0xd3b   :  { %3462 = vpow2.f32 %v2329_v36 }
 0xd3c   :  { %3464 = vrcp.f32 %v2335_v38 }
 0xd3e   :  { %v2302_v39 = vpop.xlane.xlu0 %2301 }
 0xd3f   :  { %v2314_v40 = vsub.f32 %v2281_v11, %v2302_v39 }
 0xd41   :  { %v2327_v41 = vmul.f32 1.442695, %v2314_v40 }
 0xd43   :  { %3466 = vpow2.f32 %v2327_v41 }
 0xd45   :  { %v4600_v42 = vpop.eup %3462 }
 0xd46   :  { %v3465_v43 = vpop.eup %3464  ;;  %v2351_v3 = vsel %vm2284_vm6, %v4600_v42, 0.0 }
 0xd47   :  { %v2365_v44 = vmul.f32 %v3465_v43, %v3453_v58  ;;  %2352 = vadd.xlane.f32.xlu1 %v2351_v3 }
 0xd49   :  { %2373 = vst [vmem:[#allocation8] sm:$0xf] %v2365_v44 }
 0xd4d   :  { %v3467_v45 = vpop.eup %3466 }
 0xd4e   :  { %v2348_v46 = vsel %vm2284_vm6, %v3467_v45, 0.0 }
 0xd4f   :  { %2349 = vadd.xlane.f32.xlu0 %v2348_v46 }
 0xd54   :  { %v2341_v47 = vpop.xlane.xlu1 %2340 }
 0xd55   :  { %3468 = vrcp.f32 %v2341_v47 }
 0xd58   :  { %1032 = vrot.lane.b32.xlu1 %v3913_v52, %s3582_s3  ;;  %s3585_s3 = smov [#allocation6]  }
 0xd59   :  { %s2393_s17 = sshll.u32 %s3585_s3, 4  ;;  %s2394_s17 = int_to_ptr.vmem [resolvable:$true] %s2393_s17 }
 0xd5a   :  { %s3484_s2 = scalar_lea.vmem %s2394_s17, 512  ;;  %p3489_p1 = scmp.lt.s32.totalorder %s2394_s17, %s2394_s17 }
 0xd5b   :  { %p3485_p0 = scmp.ne.s32.totalorder %s2394_s17, %s3484_s2  ;;  %p3490_p2 = scmp.lt.s32.totalorder %s3484_s2, %s3484_s2 }
 0xd5d   :  { %p3491_p3 = por %p3490_p2, %p3489_p1 }
 0xd5f   :  { %v3469_v48 = vpop.eup %3468  ;;  %p3492_p4 = pnand %p3491_p3, %p3485_p0 }
 0xd60   :  { %v2367_v49 = vmul.f32 %v3469_v48, %v3455_v12 }
 0xd62   :  { %2375 = vst [vmem:[#allocation8 + $0x8] sm:$0xf] %v2367_v49 }
 0xd7e   :  { %v2308_v54 = vpop.xlane.xlu0 %2307 }
 0xd7f   :  { %v2316_v14 = vsub.f32 %v2283_v20, %v2308_v54 }
 0xd81   :  { %v2331_v59 = vmul.f32 1.442695, %v2316_v14 }
 0xd82   :  { %v2338_v37 = vpop.xlane.xlu0 %2337 }
 0xd83   :  { %3470 = vpow2.f32 %v2331_v59 }
 0xd84   :  { %3472 = vrcp.f32 %v2338_v37 }
 0xd8d   :  { %v3471_v55 = vpop.eup %3470 }
 0xd8e   :  { %v3473_v29 = vpop.eup %3472  ;;  %v2354_v56 = vsel %vm2284_vm6, %v3471_v55, 0.0 }
 0xd8f   :  { %v2366_v30 = vmul.f32 %v3473_v29, %v3457_v8  ;;  %2355 = vadd.xlane.f32.xlu0 %v2354_v56 }
 0xd91   :  { %2374 = vst [vmem:[#allocation8 + $0x4] sm:$0xf] %v2366_v30 }
 0xd94   :  { %v2347_v32 = vpop.xlane.xlu1 %2346 }
 0xd95   :  { %3474 = vrcp.f32 %v2347_v32 }
 0xd9c   :  { %v2344_v60 = vpop.xlane.xlu0 %2343 }
 0xd9d   :  { %3476 = vrcp.f32 %v2344_v60 }
 0xd9f   :  { %v3475_v52 = vpop.eup %3474 }
 0xda0   :  { %v2369_v61 = vmul.f32 %v3475_v52, %v3459_v16 }
 0xda2   :  { %2377 = vst [vmem:[#allocation8 + $0x10] sm:$0xf] %v2369_v61 }
 0xda5   :  { %1037 = vrot.lane.b32.xlu0 %v3795_v51, %s3584_s1 }
 0xda7   :  { %v3477_v62 = vpop.eup %3476 }
 0xda8   :  { %v2368_v0 = vmul.f32 %v3477_v62, %v3461_v31 }
 0xdaa   :  { %2376 = vst [vmem:[#allocation8 + $0xc] sm:$0xf] %v2368_v0 }
 0xdab   :  { %3495 = shalt.err (!%p3492_p4)
}
 0xdac   :  { %s3496_s19 = scalar_lea.hbm %s4691_s9, 512 }
 0xdad   :  { %p3497_p5 = scmp.ne.s32.totalorder %s4691_s9, %s3496_s19  ;;  %p3500_p6 = scmp.lt.u32.totalorder %s3496_s19, %s4691_s9 }
 0xdaf   :  { %p3502_p7 = pnand %p3500_p6, %p3497_p5 }
 0xdb1   :  { %3505 = shalt.err (!%p3502_p7)
}
 0xdb2   :  { %s3586_s22 = smov 4   ;;  %s3588_s25 = smov [#allocation8]  }
 0xdb3   :  { %2399 = dma.vmem_to_hbm [thread:$0]  %s2394_s17, 512, %s4691_s9, [#allocation7], %s3581_s20, %s3581_s20, %s3586_s22  }
 0xdb4   :  { %s3587_s9 = smov [#allocation11]   ;;  %s2405_s26 = sshll.u32 %s3588_s25, 4  ;;  %s4628_s26 = int_to_ptr.vmem [resolvable:$true] %s2405_s26 }
 0xdb5   :  { %s2428_s24 = sshll.u32 %s3587_s9, 4  ;;  %s3589_s27 = smov [#allocation10]   ;;  %s2429_s24 = int_to_ptr.vmem [resolvable:$true] %s2428_s24 }
 0xdb6   :  { %s2418_s28 = sshll.u32 %s3589_s27, 4  ;;  %s3506_s29 = scalar_lea.vmem %s2429_s24, 128  ;;  %s4630_s28 = int_to_ptr.vmem [resolvable:$true] %s2418_s28 }
 0xdb7   :  { %p3507_p8 = scmp.ne.s32.totalorder %s2429_s24, %s3506_s29  ;;  %p3511_p9 = scmp.lt.s32.totalorder %s2429_s24, %s2429_s24 }
 0xdb8   :  { %p3512_p10 = scmp.lt.s32.totalorder %s3506_s29, %s3506_s29 }
 0xdba   :  { %p3513_p11 = por %p3512_p10, %p3511_p9 }
 0xdbc   :  { %p3514_p12 = pnand %p3513_p11, %p3507_p8 }
 0xdd4   :  { %v2353_v51 = vpop.xlane.xlu1 %2352 }
 0xdd5   :  { %3478 = vrcp.f32 %v2353_v51 }
 0xdd8   :  { %v1033_v1 = vpop.permute.xlu1 %1032 }
 0xdd9   :  { %1035 = vst.msk [vmem:[#allocation2] sm:$0xff] %vm44_vm1, %v1033_v1 }
 0xddc   :  { %v2350_v57 = vpop.xlane.xlu0 %2349 }
 0xddd   :  { %3480 = vrcp.f32 %v2350_v57 }
 0xddf   :  { %v3479_v2 = vpop.eup %3478 }
 0xde0   :  { %v2371_v58 = vmul.f32 %v3479_v2, %v4600_v42  ;;  %v2384_v4 = vld [vmem:[#allocation2] sm:$0xff] }
 0xde1   :  { %2385 = vst.msk [vmem:[#allocation10] sm:$0xff] %vm44_vm1, %v2384_v4 }
 0xde2   :  { %2379 = vst [vmem:[#allocation8 + $0x18] sm:$0xf] %v2371_v58 }
 0xde7   :  { %v3481_v5 = vpop.eup %3480 }
 0xde8   :  { %v2370_v11 = vmul.f32 %v3481_v5, %v3467_v45 }
 0xdea   :  { %2378 = vst [vmem:[#allocation8 + $0x14] sm:$0xf] %v2370_v11 }
 0xe1c   :  { %v2356_v53 = vpop.xlane.xlu0 %2355 }
 0xe1d   :  { %3482 = vrcp.f32 %v2356_v53 }
 0xe20   :  { %v1038_v7 = vpop.permute.xlu0 %1037 }
 0xe21   :  { %1040 = vst.msk [vmem:[#allocation3] sm:$0xff] %vm44_vm1, %v1038_v7 }
 0xe27   :  { %v3483_v25 = vpop.eup %3482 }
 0xe28   :  { %v2372_v9 = vmul.f32 %v3483_v25, %v3471_v55  ;;  %v2386_v10 = vld [vmem:[#allocation3] sm:$0xff] }
 0xe29   :  { %2387 = vst.msk [vmem:[#allocation11] sm:$0xff] %vm44_vm1, %v2386_v10 }
 0xe2a   :  { %2380 = vst [vmem:[#allocation8 + $0x1c] sm:$0xf] %v2372_v9 }
 0xe2b   :  { %3517 = shalt.err (!%p3514_p12)
}
 0xe2c   :  { %s3518_s14 = scalar_lea.hbm %s4694_s12, 128 }
 0xe2d   :  { %p3519_p13 = scmp.ne.s32.totalorder %s4694_s12, %s3518_s14  ;;  %p3522_p0 = scmp.lt.u32.totalorder %s3518_s14, %s4694_s12 }
 0xe2f   :  { %p3524_p1 = pnand %p3522_p0, %p3519_p13 }
 0xe31   :  { %3527 = shalt.err (!%p3524_p1)
}
 0xe32   :  { %2431 = dma.vmem_to_hbm [thread:$0]  %s2429_s24, 128, %s4694_s12, [#allocation12]  }
 0xe33   :  { %s3528_s2 = scalar_lea.vmem %s4628_s26, 512  ;;  %p3533_p3 = scmp.lt.s32.totalorder %s4628_s26, %s4628_s26 }
 0xe34   :  { %p3529_p2 = scmp.ne.s32.totalorder %s4628_s26, %s3528_s2  ;;  %p3534_p4 = scmp.lt.s32.totalorder %s3528_s2, %s3528_s2 }
 0xe36   :  { %p3535_p5 = por %p3534_p4, %p3533_p3 }
 0xe38   :  { %p3536_p6 = pnand %p3535_p5, %p3529_p2 }
 0xe3a   :  { %3539 = shalt.err (!%p3536_p6)
}
 0xe3b   :  { %s3540_s19 = scalar_lea.hbm %s4692_s10, 512 }
 0xe3c   :  { %p3541_p7 = scmp.ne.s32.totalorder %s4692_s10, %s3540_s19  ;;  %p3544_p8 = scmp.lt.u32.totalorder %s3540_s19, %s4692_s10 }
 0xe3e   :  { %p3546_p9 = pnand %p3544_p8, %p3541_p7 }
 0xe40   :  { %3549 = shalt.err (!%p3546_p9)
}
 0xe41   :  { %2411 = dma.vmem_to_hbm [thread:$0]  %s4628_s26, 512, %s4692_s10, [#allocation9], %s3581_s20, %s3581_s20, %s3586_s22  }
 0xe42   :  { %s3550_s0 = scalar_lea.vmem %s4630_s28, 128  ;;  %p3555_p11 = scmp.lt.s32.totalorder %s4630_s28, %s4630_s28 }
 0xe43   :  { %p3551_p10 = scmp.ne.s32.totalorder %s4630_s28, %s3550_s0  ;;  %p3556_p12 = scmp.lt.s32.totalorder %s3550_s0, %s3550_s0 }
 0xe45   :  { %p3557_p13 = por %p3556_p12, %p3555_p11 }
 0xe47   :  { %p3558_p0 = pnand %p3557_p13, %p3551_p10 }
 0xe49   :  { %3561 = shalt.err (!%p3558_p0)
}
 0xe4a   :  { %s3562_s25 = scalar_lea.hbm %s4693_s11, 128 }
 0xe4b   :  { %p3563_p1 = scmp.ne.s32.totalorder %s4693_s11, %s3562_s25  ;;  %p3566_p2 = scmp.lt.u32.totalorder %s3562_s25, %s4693_s11 }
 0xe4d   :  { %p3568_p3 = pnand %p3566_p2, %p3563_p1 }
 0xe4f   :  { %3571 = shalt.err (!%p3568_p3)
}
 0xe50   :  { %2421 = dma.vmem_to_hbm [thread:$0]  %s4630_s28, 128, %s4693_s11, [#allocation9]  }
 0xe51   :  { %3572 = dma.done.wait [#allocation7], 512  }
 0xe52   :  { %3573 = vsyncadd [#allocation7], 4294966784 }
 0xe53   :  { %3574 = dma.done.wait [#allocation9], 640  }
 0xe54   :  { %3575 = vsyncadd [#allocation9], 4294966656 }
 0xe55   :  { %3576 = dma.done.wait [#allocation12], 128  }
 0xe56   :  { %3577 = vsyncadd [#allocation12], 4294967168 }
 0xe57   :  { %2444 = vsyncpa [#allocation7], 1 }
 0xe58   :  { %2445 = vsyncpa [#allocation9], 1 }
 0xe59   :  { %2446 = vsyncpa [#allocation12], 1 }

</bundles_post_ra>
